<compile_context>
chip_gen: v7x
topology: tpu7x:2x2x1
jax: 0.10.0
libtpu: 0.0.40
codegen_flags: <defaults>
</compile_context>

<pallas_src>
import math
import jax
import jax.numpy as jnp
from jax.experimental import pallas as pl
from jax.experimental.pallas import tpu as pltpu


def _round_up(x, m):
    return ((x + m - 1) // m) * m


def _pick_tile(dim, candidates):
    for c in candidates:
        if dim % c == 0:
            return c
    return dim  # dim is always a multiple of 128, so 128 matches above


def _n_splits_for_device(npad):
    """2-way N split only on v7x (2 TensorCores/chip); single block elsewhere."""
    try:
        kind = jax.devices()[0].device_kind.lower()
    except Exception:
        kind = ""
    if "v7" in kind and npad % 256 == 0:
        return 2
    return 1


def _linear_small_kernel(x_ref, w_ref, b_ref, o_ref):
    # Everything (or one N split of it) is VMEM-resident: one fused
    # matmul + bias.  No reduction axis, no scratch, no pl.when.
    o_ref[...] = (
        jnp.dot(x_ref[...], w_ref[...], preferred_element_type=jnp.float32)
        + b_ref[...]
    )


def _linear_tiled_kernel(x_ref, w_ref, b_ref, o_ref):
    # Fallback for weights too large for VMEM: K-reduction grid; the output
    # block index is constant across k so o_ref stays VMEM-resident and we
    # accumulate straight into it (bias seeds the accumulator at k == 0).
    k = pl.program_id(0)

    @pl.when(k == 0)
    def _():
        o_ref[...] = jnp.broadcast_to(b_ref[...], o_ref.shape)

    o_ref[...] += jnp.dot(
        x_ref[...], w_ref[...], preferred_element_type=jnp.float32
    )


def prepare_params(weight, bias):
    """One-time preprocessing of nn.Linear parameters.

    weight : (N, K) f32, PyTorch (out_features, in_features) layout
    bias   : (N,)   f32
    returns: w_t (Kpad, Npad) bf16 (transposed, zero-padded),
             b_p (1, Npad)    f32  (zero-padded)
    """
    N, K = weight.shape
    Kpad = _round_up(K, 128)
    Npad = _round_up(N, 128)
    w_t = (
        jnp.zeros((Kpad, Npad), dtype=jnp.float32)
        .at[:K, :N]
        .set(weight.T)
        .astype(jnp.bfloat16)
    )
    b_p = jnp.zeros((1, Npad), dtype=jnp.float32).at[0, :N].set(bias)
    return w_t, b_p


def simple_model_forward(x_nchw, w_t, b_p, *, out_features):
    """Forward pass of SimpleModel: flatten + linear.

    x_nchw : (B, 3, size, size) f32
    w_t    : (Kpad, Npad) bf16  (from prepare_params)
    b_p    : (1, Npad)    f32   (from prepare_params)
    returns: (B, out_features) f32
    """
    B = x_nchw.shape[0]
    K = x_nchw.shape[1] * x_nchw.shape[2] * x_nchw.shape[3]
    Kpad, Npad = w_t.shape
    assert Kpad >= K and Npad >= out_features

    # Flatten (identical to nn.Flatten on contiguous NCHW), cast to bf16 and
    # zero-pad.  Batch padded to 16 rows: bf16 packs two rows per sublane.
    Bpad = _round_up(max(B, 16), 16)
    x = x_nchw.reshape(B, K).astype(jnp.bfloat16)
    x_pad = jnp.zeros((Bpad, Kpad), dtype=jnp.bfloat16).at[:B, :K].set(x)

    cost = pl.CostEstimate(
        flops=2 * Bpad * Kpad * Npad,
        bytes_accessed=(
            Kpad * Npad * 2      # W stream (bf16)
            + Bpad * Kpad * 2    # x (bf16), read once in both layouts
            + Npad * 4           # bias (f32)
            + Bpad * Npad * 4    # output (f32)
        ),
        transcendentals=0,
    )

    # Rough fully-resident VMEM footprint (W double-buffered, x resident,
    # output + bias double-buffered); stay well inside the 32 MiB scoped
    # default (v7x physical VMEM is 64 MiB).
    resident_bytes = (
        2 * Kpad * Npad * 2
        + Bpad * Kpad * 2
        + 2 * Bpad * Npad * 4
        + 2 * Npad * 4
    )

    if resident_bytes <= 16 * 1024 * 1024:
        # Hot path: one block per TensorCore.  Single block on v5e/v6e,
        # 2-way "parallel" N split on v7x (one block per core).
        n_split = _n_splits_for_device(Npad)
        tn = Npad // n_split
        out = pl.pallas_call(
            _linear_small_kernel,
            out_shape=jax.ShapeDtypeStruct((Bpad, Npad), jnp.float32),
            grid=(n_split,),
            in_specs=[
                pl.BlockSpec((Bpad, Kpad), lambda j: (0, 0)),  # x fully resident
                pl.BlockSpec((Kpad, tn), lambda j: (0, j)),
                pl.BlockSpec((1, tn), lambda j: (0, j)),
            ],
            out_specs=pl.BlockSpec((Bpad, tn), lambda j: (0, j)),
            compiler_params=pltpu.CompilerParams(
                dimension_semantics=("parallel",),
            ),
            cost_estimate=cost,
        )(x_pad, w_t, b_p)
    else:
        # Large-`size` fallback: full-N lane-dense output tile (unmasked vst,
        # stays VMEM-resident), K-reduction grid, accumulate directly into
        # o_ref -- no scratch, no acc->out copy.
        tk = _pick_tile(Kpad, (2048, 1024, 512, 384, 256, 128))
        out = pl.pallas_call(
            _linear_tiled_kernel,
            out_shape=jax.ShapeDtypeStruct((Bpad, Npad), jnp.float32),
            grid=(Kpad // tk,),
            in_specs=[
                pl.BlockSpec((Bpad, tk), lambda k: (0, k)),
                pl.BlockSpec((tk, Npad), lambda k: (k, 0)),
                pl.BlockSpec((1, Npad), lambda k: (0, 0)),
            ],
            out_specs=pl.BlockSpec((Bpad, Npad), lambda k: (0, 0)),
            compiler_params=pltpu.CompilerParams(
                dimension_semantics=("arbitrary",),
            ),
            cost_estimate=cost,
        )(x_pad, w_t, b_p)

    return out[:B, :out_features]


def init_params(size, key):
    """Deterministic init matching nn.Linear(3*size*size, 1000) shapes."""
    in_features = 3 * size * size
    out_features = 1000
    k_w, k_b = jax.random.split(key)
    bound = 1.0 / math.sqrt(in_features)  # PyTorch default uniform bound
    weight = jax.random.uniform(
        k_w, (out_features, in_features), jnp.float32, -bound, bound
    )
    bias = jax.random.uniform(k_b, (out_features,), jnp.float32, -bound, bound)
    return weight, bias


if __name__ == "__main__":
    size = 16
    batch = 2
    out_features = 1000

    key = jax.random.PRNGKey(0)
    k_x, k_p = jax.random.split(key)

    x = jax.random.normal(k_x, (batch, 3, size, size), jnp.float32)
    weight, bias = init_params(size, k_p)

    # One-time parameter preprocessing (hoisted out of the forward path).
    w_t, b_p = prepare_params(weight, bias)

    forward = jax.jit(simple_model_forward, static_argnames=("out_features",))
    y = forward(x, w_t, b_p, out_features=out_features)
    y = jax.block_until_ready(y)

    # Reference with the same bf16-rounded inputs / f32 accumulation as the kernel.
    x_flat = x.reshape(batch, -1)
    xw_bf = x_flat.astype(jnp.bfloat16).astype(jnp.float32)
    w_bf = weight.T.astype(jnp.bfloat16).astype(jnp.float32)
    y_ref_bf16 = xw_bf @ w_bf + bias
    # Full-precision f32 reference (loose tolerance due to bf16 weight stream).
    y_ref_f32 = x_flat @ weight.T + bias

    assert y.shape == (batch, out_features)
    assert jnp.allclose(y, y_ref_bf16, atol=2e-3, rtol=2e-3)
    assert jnp.allclose(y, y_ref_f32, atol=3e-2, rtol=3e-2)

    print("KERNEL_OK")
</pallas_src>

<mosaic_0001>
module attributes {stable_mosaic.version = 11 : i64} {
  func.func @_linear_small_kernel(%arg0: i32, %arg1: memref<16x768xbf16, #tpu.memory_space<vmem>>, %arg2: memref<768x1024xbf16, #tpu.memory_space<vmem>>, %arg3: memref<1x1024xf32, #tpu.memory_space<vmem>>, %arg4: memref<16x1024xf32, #tpu.memory_space<vmem>>) attributes {dimension_semantics = [#tpu.dimension_semantics<parallel>], iteration_bounds = array<i64: 1>, scalar_prefetch = 0 : i64, scratch_operands = 0 : i64, tpu.core_type = #tpu.core_type<tc>, window_params = [{pipeline_mode = #tpu.pipeline_mode<synchronous>, transform_indices = @transform_0, window_bounds = array<i64: 16, 768>}, {transform_indices = @transform_1, window_bounds = array<i64: 768, 1024>}, {transform_indices = @transform_2, window_bounds = array<i64: 1, 1024>}, {transform_indices = @transform_3, window_bounds = array<i64: 16, 1024>}]} {
    %c0 = arith.constant 0 : index
    %c0_0 = arith.constant 0 : index
    %0 = vector.load %arg1[%c0, %c0_0] : memref<16x768xbf16, #tpu.memory_space<vmem>>, vector<16x768xbf16>
    %c0_1 = arith.constant 0 : index
    %c0_2 = arith.constant 0 : index
    %1 = vector.load %arg2[%c0_1, %c0_2] : memref<768x1024xbf16, #tpu.memory_space<vmem>>, vector<768x1024xbf16>
    %cst = arith.constant dense<0.000000e+00> : vector<16x1024xf32>
    %2 = tpu.matmul %0, %1, %cst {dimension_numbers = #tpu.dot_dimension_numbers<[1], [0], [0], [1], [0, 0, 1, 1], [], []>} : vector<16x768xbf16>, vector<768x1024xbf16>, vector<16x1024xf32> -> vector<16x1024xf32>
    %c0_3 = arith.constant 0 : index
    %c0_4 = arith.constant 0 : index
    %3 = vector.load %arg3[%c0_3, %c0_4] : memref<1x1024xf32, #tpu.memory_space<vmem>>, vector<1x1024xf32>
    %4 = vector.broadcast %3 : vector<1x1024xf32> to vector<16x1024xf32>
    %5 = arith.addf %2, %4 : vector<16x1024xf32>
    %c0_5 = arith.constant 0 : index
    %c0_6 = arith.constant 0 : index
    %6 = vector.load %arg4[%c0_5, %c0_6] : memref<16x1024xf32, #tpu.memory_space<vmem>>, vector<16x1024xf32>
    tpu.vector_store %arg4[%c0_5, %c0_6], %5 {strides = array<i32>} : memref<16x1024xf32, #tpu.memory_space<vmem>>, vector<16x1024xf32>,
    return
  }
  func.func @transform_0(%arg0: i32) -> (i32, i32) {
    %c0_i32 = arith.constant 0 : i32
    %c0_i32_0 = arith.constant 0 : i32
    %c0_i32_1 = arith.constant 0 : i32
    return %c0_i32, %c0_i32_0 : i32, i32
  }
  func.func @transform_1(%arg0: i32) -> (i32, i32) {
    %c0_i32 = arith.constant 0 : i32
    %c0_i32_0 = arith.constant 0 : i32
    return %c0_i32, %arg0 : i32, i32
  }
  func.func @transform_2(%arg0: i32) -> (i32, i32) {
    %c0_i32 = arith.constant 0 : i32
    %c0_i32_0 = arith.constant 0 : i32
    return %c0_i32, %arg0 : i32, i32
  }
  func.func @transform_3(%arg0: i32) -> (i32, i32) {
    %c0_i32 = arith.constant 0 : i32
    %c0_i32_0 = arith.constant 0 : i32
    return %c0_i32, %arg0 : i32, i32
  }
}

</mosaic_0001>

<bundles_post_ra>
// kernel: simple_model_forward.1
= control target key start
LH: loop header
LB: loop body
LE: loop exit
PB: predicated region body
PF: predicated region fallthrough
CT: control target
= control target key end

     0   :  { %8 = vsyncpa [#allocation3], 0  ;;  %s3597_s0 = inlined_call_operand.vmem [shape: bf16[16,768], index: 0, kind: input, shape index: {}]   ;;  %s3598_s1 = inlined_call_operand.hbm [shape: bf16[768,1024], index: 1, kind: input, shape index: {}]   ;;  %s3599_s2 = inlined_call_operand.hbm [shape: f32[1,1024], index: 2, kind: input, shape index: {}]   ;;  %s3600_s3 = inlined_call_operand.vmem [shape: f32[16,1024], index: 3, kind: output, shape index: {}]  }
   0x1   :  { %9 = vsyncpa [#allocation5], 0  ;;  %s3465_s12 = smov [#allocation2]   ;;  %s3417_s16 = scalar_lea.hbm %s3598_s1, 49152 }
   0x2   :  { %s17_s13 = sshll.u32 %s3465_s12, 4  ;;  %p3418_p0 = scmp.ne.s32.totalorder %s3598_s1, %s3417_s16  ;;  %s18_s13 = int_to_ptr.vmem [resolvable:$true] %s17_s13 }
   0x3   :  { %p3421_p1 = scmp.lt.u32.totalorder %s3417_s16, %s3598_s1 }
   0x5   :  { %p3423_p2 = pnand %p3421_p1, %p3418_p0 }
   0x7   :  { %3426 = shalt.err (!%p3423_p2)
}
   0x8   :  { %s3427_s21 = scalar_lea.vmem %s18_s13, 49152  ;;  %p3432_p4 = scmp.lt.s32.totalorder %s18_s13, %s18_s13 }
   0x9   :  { %p3428_p3 = scmp.ne.s32.totalorder %s18_s13, %s3427_s21  ;;  %p3433_p5 = scmp.lt.s32.totalorder %s3427_s21, %s3427_s21 }
   0xb   :  { %p3434_p6 = por %p3433_p5, %p3432_p4 }
   0xd   :  { %p3435_p7 = pnand %p3434_p6, %p3428_p3 }
   0xf   :  { %3438 = shalt.err (!%p3435_p7)
}
  0x10   :  { %s3466_s22 = smov 512   ;;  %s3467_s23 = smov 32  }
  0x11   :  { %23 = dma.hbm_to_vmem [thread:$0]  %s3598_s1, 49152, %s18_s13, [#allocation3], %s3466_s22, %s3466_s22, %s3467_s23  }
  0x12   :  { %s3468_s26 = smov [#allocation4]   ;;  %s3439_s30 = scalar_lea.hbm %s3599_s2, 128 }
  0x13   :  { %s30_s27 = sshll.u32 %s3468_s26, 4  ;;  %p3440_p8 = scmp.ne.s32.totalorder %s3599_s2, %s3439_s30  ;;  %s31_s27 = int_to_ptr.vmem [resolvable:$true] %s30_s27 }
  0x14   :  { %p3443_p9 = scmp.lt.u32.totalorder %s3439_s30, %s3599_s2 }
  0x16   :  { %p3445_p10 = pnand %p3443_p9, %p3440_p8 }
  0x18   :  { %3448 = shalt.err (!%p3445_p10)
}
  0x19   :  { %s3449_s8 = scalar_lea.vmem %s31_s27, 128  ;;  %p3454_p12 = scmp.lt.s32.totalorder %s31_s27, %s31_s27 }
  0x1a   :  { %p3450_p11 = scmp.ne.s32.totalorder %s31_s27, %s3449_s8  ;;  %p3455_p13 = scmp.lt.s32.totalorder %s3449_s8, %s3449_s8 }
  0x1c   :  { %p3456_p0 = por %p3455_p13, %p3454_p12 }
  0x1e   :  { %p3457_p1 = pnand %p3456_p0, %p3450_p11 }
  0x20   :  { %3460 = shalt.err (!%p3457_p1)
}
  0x21   :  { %33 = dma.hbm_to_vmem [thread:$0]  %s3599_s2, 128, %s31_s27, [#allocation5]  }
  0x22   :  { %3461 = dma.done.wait [#allocation3], 49152  }
  0x23   :  { %3462 = vsyncadd [#allocation3], 4294918144 }
  0x24   :  { %3463 = dma.done.wait [#allocation5], 128  }
  0x25   :  { %3464 = vsyncadd [#allocation5], 4294967168  ;;  %v46_v0 = vld [vmem:[#allocation2] sm:$0xff]  ;;  %v47_v2 = vld [vmem:[#allocation2 + $0x8] sm:$0xff] }
  0x26   :  { %v50_v1 = vld [vmem:[#allocation2 + $0x20] sm:$0xff]  ;;  %v51_v4 = vld [vmem:[#allocation2 + $0x28] sm:$0xff] }
  0x27   :  { %v2967_v3 = vcombine.high %v46_v0, %v50_v1  ;;  %v2966_v5 = vcombine.low %v46_v0, %v50_v1  ;;  %v54_v6 = vld [vmem:[#allocation2 + $0x40] sm:$0xff]  ;;  %v2969_v8 = vcombine.high %v47_v2, %v51_v4  ;;  %v2968_v9 = vcombine.low %v47_v2, %v51_v4  ;;  %v55_v11 = vld [vmem:[#allocation2 + $0x48] sm:$0xff] }
  0x28   :  { %v58_v7 = vld [vmem:[#allocation2 + $0x60] sm:$0xff]  ;;  %v59_v12 = vld [vmem:[#allocation2 + $0x68] sm:$0xff] }
  0x29   :  { %v2975_v10 = vcombine.high %v54_v6, %v58_v7  ;;  %v62_v13 = vld [vmem:[#allocation2 + $0x80] sm:$0xff]  ;;  %2422 = vmatprep.subr.bf16.mxu0 %v2967_v3  ;;  %v2977_v14 = vcombine.high %v55_v11, %v59_v12  ;;  %v63_v16 = vld [vmem:[#allocation2 + $0x88] sm:$0xff]  ;;  %2551 = vmatprep.subr.bf16.mxu1 %v2969_v8  ;;  %v2974_v18 = vcombine.low %v54_v6, %v58_v7 }
  0x2a   :  { %v66_v15 = vld [vmem:[#allocation2 + $0xa0] sm:$0xff]  ;;  %v67_v17 = vld [vmem:[#allocation2 + $0xa8] sm:$0xff]  ;;  %2423 = vmatpush1.bf16.msra.mxu0 %v2966_v5  ;;  %2552 = vmatpush1.bf16.msra.mxu1 %v2968_v9  ;;  %v2976_v19 = vcombine.low %v55_v11, %v59_v12 }
  0x2b   :  { %2424 = vmatprep.subr.bf16.mxu0 %v2975_v10  ;;  %v2983_v20 = vcombine.high %v62_v13, %v66_v15  ;;  %2553 = vmatprep.subr.bf16.mxu1 %v2977_v14  ;;  %v2985_v21 = vcombine.high %v63_v16, %v67_v17  ;;  %v70_v22 = vld [vmem:[#allocation2 + $0xc0] sm:$0xff]  ;;  %v71_v24 = vld [vmem:[#allocation2 + $0xc8] sm:$0xff]  ;;  %v2982_v26 = vcombine.low %v62_v13, %v66_v15 }
  0x2c   :  { %v74_v23 = vld [vmem:[#allocation2 + $0xe0] sm:$0xff]  ;;  %v75_v25 = vld [vmem:[#allocation2 + $0xe8] sm:$0xff]  ;;  %v2984_v27 = vcombine.low %v63_v16, %v67_v17 }
  0x2d   :  { %v2991_v28 = vcombine.high %v70_v22, %v74_v23  ;;  %v2993_v29 = vcombine.high %v71_v24, %v75_v25  ;;  %v78_v30 = vld [vmem:[#allocation2 + $0x100] sm:$0xff]  ;;  %v79_v32 = vld [vmem:[#allocation2 + $0x108] sm:$0xff]  ;;  %v2990_v34 = vcombine.low %v70_v22, %v74_v23  ;;  %v2992_v35 = vcombine.low %v71_v24, %v75_v25 }
  0x2e   :  { %2425 = vmatpush1.bf16.msra.mxu0 %v2974_v18  ;;  %2554 = vmatpush1.bf16.msra.mxu1 %v2976_v19  ;;  %v82_v31 = vld [vmem:[#allocation2 + $0x120] sm:$0xff]  ;;  %v83_v33 = vld [vmem:[#allocation2 + $0x128] sm:$0xff] }
  0x2f   :  { %2426 = vmatprep.subr.bf16.mxu0 %v2983_v20  ;;  %2555 = vmatprep.subr.bf16.mxu1 %v2985_v21  ;;  %v2999_v36 = vcombine.high %v78_v30, %v82_v31  ;;  %v3001_v37 = vcombine.high %v79_v32, %v83_v33  ;;  %v86_v38 = vld [vmem:[#allocation2 + $0x140] sm:$0xff]  ;;  %v87_v40 = vld [vmem:[#allocation2 + $0x148] sm:$0xff]  ;;  %v2998_v42 = vcombine.low %v78_v30, %v82_v31 }
  0x30   :  { %v90_v39 = vld [vmem:[#allocation2 + $0x160] sm:$0xff]  ;;  %v91_v41 = vld [vmem:[#allocation2 + $0x168] sm:$0xff]  ;;  %v3000_v43 = vcombine.low %v79_v32, %v83_v33 }
  0x31   :  { %v3007_v44 = vcombine.high %v86_v38, %v90_v39  ;;  %v3009_v45 = vcombine.high %v87_v40, %v91_v41  ;;  %v94_v46 = vld [vmem:[#allocation2 + $0x180] sm:$0xff]  ;;  %v95_v48 = vld [vmem:[#allocation2 + $0x188] sm:$0xff]  ;;  %v3006_v50 = vcombine.low %v86_v38, %v90_v39  ;;  %v3008_v51 = vcombine.low %v87_v40, %v91_v41 }
  0x32   :  { %2427 = vmatpush1.bf16.msra.mxu0 %v2982_v26  ;;  %2556 = vmatpush1.bf16.msra.mxu1 %v2984_v27  ;;  %v98_v47 = vld [vmem:[#allocation2 + $0x1a0] sm:$0xff]  ;;  %v99_v49 = vld [vmem:[#allocation2 + $0x1a8] sm:$0xff] }
  0x33   :  { %2428 = vmatprep.subr.bf16.mxu0 %v2991_v28  ;;  %2557 = vmatprep.subr.bf16.mxu1 %v2993_v29  ;;  %v3015_v52 = vcombine.high %v94_v46, %v98_v47  ;;  %v3017_v53 = vcombine.high %v95_v48, %v99_v49  ;;  %v102_v54 = vld [vmem:[#allocation2 + $0x1c0] sm:$0xff]  ;;  %v103_v57 = vld [vmem:[#allocation2 + $0x1c8] sm:$0xff]  ;;  %v3014_v59 = vcombine.low %v94_v46, %v98_v47 }
  0x34   :  { %v106_v55 = vld [vmem:[#allocation2 + $0x1e0] sm:$0xff]  ;;  %v107_v58 = vld [vmem:[#allocation2 + $0x1e8] sm:$0xff]  ;;  %v3016_v60 = vcombine.low %v95_v48, %v99_v49 }
  0x35   :  { %v3402_v56 = vld [vmem:[%s3597_s0 + $0x4] ss:$24 sps:$4 sm:$0xff]   ;;  %v3023_v61 = vcombine.high %v102_v54, %v106_v55  ;;  %v3025_v62 = vcombine.high %v103_v57, %v107_v58  ;;  %v111_v1 = vld [vmem:[#allocation2 + $0x208] sm:$0xff]  ;;  %v3022_v3 = vcombine.low %v102_v54, %v106_v55  ;;  %v3024_v4 = vcombine.low %v103_v57, %v107_v58 }
  0x36   :  { %2429 = vmatpush1.bf16.msra.mxu0 %v2990_v34  ;;  %2558 = vmatpush1.bf16.msra.mxu1 %v2992_v35  ;;  %v110_v63 = vld [vmem:[#allocation2 + $0x200] sm:$0xff]  ;;  %v115_v2 = vld [vmem:[#allocation2 + $0x228] sm:$0xff] }
  0x37   :  { %2430 = vmatprep.subr.bf16.mxu0 %v2999_v36  ;;  %2559 = vmatprep.subr.bf16.mxu1 %v3001_v37  ;;  %v114_v0 = vld [vmem:[#allocation2 + $0x220] sm:$0xff]  ;;  %v3033_v6 = vcombine.high %v111_v1, %v115_v2  ;;  %v119_v9 = vld [vmem:[#allocation2 + $0x248] sm:$0xff]  ;;  %v3032_v12 = vcombine.low %v111_v1, %v115_v2 }
  0x38   :  { %2454 = vmatprep.mubr.bf16.mxu0 %v3402_v56  ;;  %2583 = vmatprep.mubr.bf16.mxu1 %v3402_v56  ;;  %v3031_v5 = vcombine.high %v110_v63, %v114_v0  ;;  %v118_v7 = vld [vmem:[#allocation2 + $0x240] sm:$0xff]  ;;  %v123_v10 = vld [vmem:[#allocation2 + $0x268] sm:$0xff]  ;;  %v3030_v11 = vcombine.low %v110_v63, %v114_v0 }
  0x39   :  { %v122_v8 = vld [vmem:[#allocation2 + $0x260] sm:$0xff]  ;;  %v3041_v14 = vcombine.high %v119_v9, %v123_v10  ;;  %v127_v17 = vld [vmem:[#allocation2 + $0x288] sm:$0xff]  ;;  %v3040_v20 = vcombine.low %v119_v9, %v123_v10 }
  0x3a   :  { %2431 = vmatpush1.bf16.msra.mxu0 %v2998_v42  ;;  %2560 = vmatpush1.bf16.msra.mxu1 %v3000_v43  ;;  %v3039_v13 = vcombine.high %v118_v7, %v122_v8  ;;  %v126_v15 = vld [vmem:[#allocation2 + $0x280] sm:$0xff]  ;;  %v131_v18 = vld [vmem:[#allocation2 + $0x2a8] sm:$0xff]  ;;  %v3038_v19 = vcombine.low %v118_v7, %v122_v8 }
  0x3b   :  { %2432 = vmatprep.subr.bf16.mxu0 %v3007_v44  ;;  %2561 = vmatprep.subr.bf16.mxu1 %v3009_v45  ;;  %v130_v16 = vld [vmem:[#allocation2 + $0x2a0] sm:$0xff]  ;;  %v3049_v22 = vcombine.high %v127_v17, %v131_v18  ;;  %v135_v25 = vld [vmem:[#allocation2 + $0x2c8] sm:$0xff]  ;;  %v3048_v28 = vcombine.low %v127_v17, %v131_v18 }
  0x3c   :  { %v3047_v21 = vcombine.high %v126_v15, %v130_v16  ;;  %v134_v23 = vld [vmem:[#allocation2 + $0x2c0] sm:$0xff]  ;;  %v139_v26 = vld [vmem:[#allocation2 + $0x2e8] sm:$0xff]  ;;  %v3046_v27 = vcombine.low %v126_v15, %v130_v16 }
  0x3d   :  { %v138_v24 = vld [vmem:[#allocation2 + $0x2e0] sm:$0xff]  ;;  %v3057_v30 = vcombine.high %v135_v25, %v139_v26  ;;  %v143_v33 = vld [vmem:[#allocation2 + $0x308] sm:$0xff]  ;;  %v3056_v36 = vcombine.low %v135_v25, %v139_v26 }
  0x3e   :  { %2433 = vmatpush1.bf16.msra.mxu0 %v3006_v50  ;;  %2562 = vmatpush1.bf16.msra.mxu1 %v3008_v51  ;;  %v3055_v29 = vcombine.high %v134_v23, %v138_v24  ;;  %v142_v31 = vld [vmem:[#allocation2 + $0x300] sm:$0xff]  ;;  %v147_v34 = vld [vmem:[#allocation2 + $0x328] sm:$0xff]  ;;  %v3054_v35 = vcombine.low %v134_v23, %v138_v24 }
  0x3f   :  { %2434 = vmatprep.subr.bf16.mxu0 %v3015_v52  ;;  %2563 = vmatprep.subr.bf16.mxu1 %v3017_v53  ;;  %v146_v32 = vld [vmem:[#allocation2 + $0x320] sm:$0xff]  ;;  %v3065_v38 = vcombine.high %v143_v33, %v147_v34  ;;  %v151_v41 = vld [vmem:[#allocation2 + $0x348] sm:$0xff]  ;;  %v3064_v44 = vcombine.low %v143_v33, %v147_v34 }
  0x40   :  { %v3063_v37 = vcombine.high %v142_v31, %v146_v32  ;;  %v150_v39 = vld [vmem:[#allocation2 + $0x340] sm:$0xff]  ;;  %v155_v42 = vld [vmem:[#allocation2 + $0x368] sm:$0xff]  ;;  %v3062_v43 = vcombine.low %v142_v31, %v146_v32 }
  0x41   :  { %v154_v40 = vld [vmem:[#allocation2 + $0x360] sm:$0xff]  ;;  %v3073_v46 = vcombine.high %v151_v41, %v155_v42  ;;  %v159_v49 = vld [vmem:[#allocation2 + $0x388] sm:$0xff]  ;;  %v3072_v52 = vcombine.low %v151_v41, %v155_v42 }
  0x42   :  { %2435 = vmatpush1.bf16.msra.mxu0 %v3014_v59  ;;  %2564 = vmatpush1.bf16.msra.mxu1 %v3016_v60  ;;  %v3071_v45 = vcombine.high %v150_v39, %v154_v40  ;;  %v158_v47 = vld [vmem:[#allocation2 + $0x380] sm:$0xff]  ;;  %v163_v50 = vld [vmem:[#allocation2 + $0x3a8] sm:$0xff]  ;;  %v3070_v51 = vcombine.low %v150_v39, %v154_v40 }
  0x43   :  { %2436 = vmatprep.subr.bf16.mxu0 %v3023_v61  ;;  %2565 = vmatprep.subr.bf16.mxu1 %v3025_v62  ;;  %v162_v48 = vld [vmem:[#allocation2 + $0x3a0] sm:$0xff]  ;;  %v3081_v54 = vcombine.high %v159_v49, %v163_v50  ;;  %v167_v57 = vld [vmem:[#allocation2 + $0x3c8] sm:$0xff]  ;;  %v3080_v60 = vcombine.low %v159_v49, %v163_v50 }
  0x44   :  { %v3079_v53 = vcombine.high %v158_v47, %v162_v48  ;;  %v166_v55 = vld [vmem:[#allocation2 + $0x3c0] sm:$0xff]  ;;  %v171_v58 = vld [vmem:[#allocation2 + $0x3e8] sm:$0xff]  ;;  %v3078_v59 = vcombine.low %v158_v47, %v162_v48 }
  0x45   :  { %v170_v56 = vld [vmem:[#allocation2 + $0x3e0] sm:$0xff]  ;;  %v3089_v62 = vcombine.high %v167_v57, %v171_v58  ;;  %v175_v1 = vld [vmem:[#allocation2 + $0x408] sm:$0xff] }
  0x46   :  { %2437 = vmatpush1.bf16.msra.mxu0 %v3022_v3  ;;  %2566 = vmatpush1.bf16.msra.mxu1 %v3024_v4  ;;  %v3087_v61 = vcombine.high %v166_v55, %v170_v56  ;;  %v174_v63 = vld [vmem:[#allocation2 + $0x400] sm:$0xff]  ;;  %v179_v2 = vld [vmem:[#allocation2 + $0x428] sm:$0xff]  ;;  %v3086_v3 = vcombine.low %v166_v55, %v170_v56  ;;  %v3088_v4 = vcombine.low %v167_v57, %v171_v58 }
  0x47   :  { %2438 = vmatprep.subr.bf16.mxu0 %v3031_v5  ;;  %2567 = vmatprep.subr.bf16.mxu1 %v3033_v6  ;;  %v178_v0 = vld [vmem:[#allocation2 + $0x420] sm:$0xff]  ;;  %v3097_v6 = vcombine.high %v175_v1, %v179_v2  ;;  %v183_v10 = vld [vmem:[#allocation2 + $0x448] sm:$0xff] }
  0x48   :  { %v3095_v5 = vcombine.high %v174_v63, %v178_v0  ;;  %v182_v7 = vld [vmem:[#allocation2 + $0x440] sm:$0xff] }
  0x49   :  { %v186_v8 = vld [vmem:[#allocation2 + $0x460] sm:$0xff] }
  0x4a   :  { %2439 = vmatpush1.bf16.msra.mxu0 %v3030_v11  ;;  %2568 = vmatpush1.bf16.msra.mxu1 %v3032_v12  ;;  %v3404_v9 = vld [vmem:[%s3597_s0] ss:$24 sps:$4 sm:$0xff]   ;;  %v187_v11 = vld [vmem:[#allocation2 + $0x468] sm:$0xff]  ;;  %v3094_v12 = vcombine.low %v174_v63, %v178_v0 }
  0x4b   :  { %2440 = vmatprep.subr.bf16.mxu0 %v3039_v13  ;;  %2569 = vmatprep.subr.bf16.mxu1 %v3041_v14  ;;  %v3096_v13 = vcombine.low %v175_v1, %v179_v2  ;;  %v3103_v14 = vcombine.high %v182_v7, %v186_v8  ;;  %v190_v15 = vld [vmem:[#allocation2 + $0x480] sm:$0xff]  ;;  %v3105_v16 = vcombine.high %v183_v10, %v187_v11 }
  0x4c   :  { %v194_v17 = vld [vmem:[#allocation2 + $0x4a0] sm:$0xff] }
  0x4d   :  { %v3405_v18 = vld [vmem:[%s3597_s0 + $0xc] ss:$24 sps:$4 sm:$0xff]   ;;  %v3111_v23 = vcombine.high %v190_v15, %v194_v17 }
  0x4e   :  { %2441 = vmatpush1.bf16.msra.mxu0 %v3038_v19  ;;  %2570 = vmatpush1.bf16.msra.mxu1 %v3040_v20  ;;  %v191_v19 = vld [vmem:[#allocation2 + $0x488] sm:$0xff]  ;;  %v198_v25 = vld [vmem:[#allocation2 + $0x4c0] sm:$0xff] }
  0x4f   :  { %2442 = vmatprep.subr.bf16.mxu0 %v3047_v21  ;;  %2571 = vmatprep.subr.bf16.mxu1 %v3049_v22  ;;  %v195_v20 = vld [vmem:[#allocation2 + $0x4a8] sm:$0xff]  ;;  %v3102_v21 = vcombine.low %v182_v7, %v186_v8  ;;  %v3104_v22 = vcombine.low %v183_v10, %v187_v11  ;;  %v202_v26 = vld [vmem:[#allocation2 + $0x4e0] sm:$0xff] }
  0x50   :  { %v3113_v24 = vcombine.high %v191_v19, %v195_v20  ;;  %v3119_v31 = vcombine.high %v198_v25, %v202_v26  ;;  %v206_v33 = vld [vmem:[#allocation2 + $0x500] sm:$0xff]  ;;  %v247_v11 = vld [vmem:[#allocation2 + $0x648] sm:$0xff] }
  0x51   :  { %v210_v34 = vld [vmem:[#allocation2 + $0x520] sm:$0xff] }
  0x52   :  { %2443 = vmatpush1.bf16.msra.mxu0 %v3046_v27  ;;  %2572 = vmatpush1.bf16.msra.mxu1 %v3048_v28  ;;  %v199_v27 = vld [vmem:[#allocation2 + $0x4c8] sm:$0xff]  ;;  %v3127_v39 = vcombine.high %v206_v33, %v210_v34  ;;  %v214_v41 = vld [vmem:[#allocation2 + $0x540] sm:$0xff] }
  0x53   :  { %2444 = vmatprep.subr.bf16.mxu0 %v3055_v29  ;;  %2573 = vmatprep.subr.bf16.mxu1 %v3057_v30  ;;  %v203_v28 = vld [vmem:[#allocation2 + $0x4e8] sm:$0xff]  ;;  %v3110_v29 = vcombine.low %v190_v15, %v194_v17  ;;  %v3112_v30 = vcombine.low %v191_v19, %v195_v20  ;;  %v218_v42 = vld [vmem:[#allocation2 + $0x560] sm:$0xff] }
  0x54   :  { %v3121_v32 = vcombine.high %v199_v27, %v203_v28  ;;  %v3135_v47 = vcombine.high %v214_v41, %v218_v42  ;;  %v222_v49 = vld [vmem:[#allocation2 + $0x580] sm:$0xff]  ;;  %v255_v19 = vld [vmem:[#allocation2 + $0x688] sm:$0xff] }
  0x55   :  { %v226_v50 = vld [vmem:[#allocation2 + $0x5a0] sm:$0xff]  ;;  %v259_v20 = vld [vmem:[#allocation2 + $0x6a8] sm:$0xff] }
  0x56   :  { %2445 = vmatpush1.bf16.msra.mxu0 %v3054_v35  ;;  %2574 = vmatpush1.bf16.msra.mxu1 %v3056_v36  ;;  %v207_v35 = vld [vmem:[#allocation2 + $0x508] sm:$0xff]  ;;  %v3143_v55 = vcombine.high %v222_v49, %v226_v50  ;;  %v230_v57 = vld [vmem:[#allocation2 + $0x5c0] sm:$0xff] }
  0x57   :  { %2446 = vmatprep.subr.bf16.mxu0 %v3063_v37  ;;  %2575 = vmatprep.subr.bf16.mxu1 %v3065_v38  ;;  %v211_v36 = vld [vmem:[#allocation2 + $0x528] sm:$0xff]  ;;  %v3118_v37 = vcombine.low %v198_v25, %v202_v26  ;;  %v3120_v38 = vcombine.low %v199_v27, %v203_v28  ;;  %v234_v58 = vld [vmem:[#allocation2 + $0x5e0] sm:$0xff] }
  0x58   :  { %v3129_v40 = vcombine.high %v207_v35, %v211_v36  ;;  %v3151_v63 = vcombine.high %v230_v57, %v234_v58  ;;  %v238_v1 = vld [vmem:[#allocation2 + $0x600] sm:$0xff]  ;;  %v263_v27 = vld [vmem:[#allocation2 + $0x6c8] sm:$0xff] }
  0x59   :  { %v242_v2 = vld [vmem:[#allocation2 + $0x620] sm:$0xff]  ;;  %v267_v28 = vld [vmem:[#allocation2 + $0x6e8] sm:$0xff] }
  0x5a   :  { %2447 = vmatpush1.bf16.msra.mxu0 %v3062_v43  ;;  %2576 = vmatpush1.bf16.msra.mxu1 %v3064_v44  ;;  %v215_v43 = vld [vmem:[#allocation2 + $0x548] sm:$0xff]  ;;  %v3159_v7 = vcombine.high %v238_v1, %v242_v2  ;;  %v250_v10 = vld [vmem:[#allocation2 + $0x660] sm:$0xff] }
  0x5b   :  { %2448 = vmatprep.subr.bf16.mxu0 %v3071_v45  ;;  %2577 = vmatprep.subr.bf16.mxu1 %v3073_v46  ;;  %v219_v44 = vld [vmem:[#allocation2 + $0x568] sm:$0xff]  ;;  %v3126_v45 = vcombine.low %v206_v33, %v210_v34  ;;  %v3128_v46 = vcombine.low %v207_v35, %v211_v36  ;;  %v254_v17 = vld [vmem:[#allocation2 + $0x680] sm:$0xff] }
  0x5c   :  { %v3137_v48 = vcombine.high %v215_v43, %v219_v44  ;;  %v262_v25 = vld [vmem:[#allocation2 + $0x6c0] sm:$0xff]  ;;  %v271_v35 = vld [vmem:[#allocation2 + $0x708] sm:$0xff] }
  0x5d   :  { %v266_v26 = vld [vmem:[#allocation2 + $0x6e0] sm:$0xff]  ;;  %v275_v36 = vld [vmem:[#allocation2 + $0x728] sm:$0xff] }
  0x5e   :  { %2449 = vmatpush1.bf16.msra.mxu0 %v3070_v51  ;;  %2578 = vmatpush1.bf16.msra.mxu1 %v3072_v52  ;;  %v223_v51 = vld [vmem:[#allocation2 + $0x588] sm:$0xff]  ;;  %v270_v33 = vld [vmem:[#allocation2 + $0x700] sm:$0xff] }
  0x5f   :  { %2450 = vmatprep.subr.bf16.mxu0 %v3079_v53  ;;  %2579 = vmatprep.subr.bf16.mxu1 %v3081_v54  ;;  %v227_v52 = vld [vmem:[#allocation2 + $0x5a8] sm:$0xff]  ;;  %v3134_v53 = vcombine.low %v214_v41, %v218_v42  ;;  %v3136_v54 = vcombine.low %v215_v43, %v219_v44  ;;  %v274_v34 = vld [vmem:[#allocation2 + $0x720] sm:$0xff] }
  0x60   :  { %v3145_v56 = vcombine.high %v223_v51, %v227_v52  ;;  %v278_v41 = vld [vmem:[#allocation2 + $0x740] sm:$0xff]  ;;  %v279_v43 = vld [vmem:[#allocation2 + $0x748] sm:$0xff] }
  0x61   :  { %v282_v42 = vld [vmem:[#allocation2 + $0x760] sm:$0xff]  ;;  %v283_v44 = vld [vmem:[#allocation2 + $0x768] sm:$0xff] }
  0x62   :  { %2451 = vmatpush1.bf16.msra.mxu0 %v3078_v59  ;;  %2580 = vmatpush1.bf16.msra.mxu1 %v3080_v60  ;;  %v231_v59 = vld [vmem:[#allocation2 + $0x5c8] sm:$0xff] }
  0x63   :  { %2452 = vmatprep.subr.bf16.mxu0 %v3087_v61  ;;  %2581 = vmatprep.subr.bf16.mxu1 %v3089_v62  ;;  %v235_v60 = vld [vmem:[#allocation2 + $0x5e8] sm:$0xff]  ;;  %v3142_v61 = vcombine.low %v222_v49, %v226_v50  ;;  %v3144_v62 = vcombine.low %v223_v51, %v227_v52  ;;  %v286_v49 = vld [vmem:[#allocation2 + $0x780] sm:$0xff] }
  0x64   :  { %v3153_v0 = vcombine.high %v231_v59, %v235_v60  ;;  %v290_v50 = vld [vmem:[#allocation2 + $0x7a0] sm:$0xff]  ;;  %v287_v51 = vld [vmem:[#allocation2 + $0x788] sm:$0xff] }
  0x65   :  { %v291_v52 = vld [vmem:[#allocation2 + $0x7a8] sm:$0xff] }
  0x66   :  { %2453 = vmatpush1.bf16.msra.mxu0 %v3086_v3  ;;  %2582 = vmatpush1.bf16.msra.mxu1 %v3088_v4  ;;  %v239_v3 = vld [vmem:[#allocation2 + $0x608] sm:$0xff] }
  0x67   :  { %2465 = vmatprep.subr.bf16.mxu0 %v3095_v5  ;;  %2594 = vmatprep.subr.bf16.mxu1 %v3097_v6  ;;  %v243_v4 = vld [vmem:[#allocation2 + $0x628] sm:$0xff]  ;;  %v3150_v5 = vcombine.low %v230_v57, %v234_v58  ;;  %v3152_v6 = vcombine.low %v231_v59, %v235_v60  ;;  %v294_v57 = vld [vmem:[#allocation2 + $0x7c0] sm:$0xff] }
  0x68   :  { %v3161_v8 = vcombine.high %v239_v3, %v243_v4  ;;  %v298_v58 = vld [vmem:[#allocation2 + $0x7e0] sm:$0xff]  ;;  %v295_v59 = vld [vmem:[#allocation2 + $0x7c8] sm:$0xff] }
  0x69   :  { %2455 = vmatmul.mubr.bf16.vlgmr.msra.gmra.mrb[0].mxu0 %v3404_v9  ;;  %2584 = vmatmul.mubr.bf16.vlgmr.msra.gmra.mrb[0].mxu1 %v3404_v9  ;;  %v246_v9 = vld [vmem:[#allocation2 + $0x640] sm:$0xff]  ;;  %v299_v60 = vld [vmem:[#allocation2 + $0x7e8] sm:$0xff] }
  0x6a   :  { %2466 = vmatpush1.bf16.msra.mxu0 %v3094_v12  ;;  %2595 = vmatpush1.bf16.msra.mxu1 %v3096_v13  ;;  %v251_v12 = vld [vmem:[#allocation2 + $0x668] sm:$0xff]  ;;  %v3158_v13 = vcombine.low %v238_v1, %v242_v2  ;;  %v3167_v15 = vcombine.high %v246_v9, %v250_v10  ;;  %v302_v1 = vld [vmem:[#allocation2 + $0x800] sm:$0xff] }
  0x6b   :  { %2467 = vmatprep.subr.bf16.mxu0 %v3103_v14  ;;  %2596 = vmatprep.subr.bf16.mxu1 %v3105_v16  ;;  %v3160_v14 = vcombine.low %v239_v3, %v243_v4  ;;  %v3169_v16 = vcombine.high %v247_v11, %v251_v12  ;;  %v306_v2 = vld [vmem:[#allocation2 + $0x820] sm:$0xff]  ;;  %v303_v3 = vld [vmem:[#allocation2 + $0x808] sm:$0xff] }
  0x6c   :  { %2497 = vmatprep.mubr.bf16.mxu0 %v3405_v18  ;;  %2626 = vmatprep.mubr.bf16.mxu1 %v3405_v18  ;;  %v258_v18 = vld [vmem:[#allocation2 + $0x6a0] sm:$0xff]  ;;  %v307_v4 = vld [vmem:[#allocation2 + $0x828] sm:$0xff] }
  0x6e   :  { %2468 = vmatpush1.bf16.msra.mxu0 %v3102_v21  ;;  %2597 = vmatpush1.bf16.msra.mxu1 %v3104_v22  ;;  %v3166_v21 = vcombine.low %v246_v9, %v250_v10  ;;  %v3168_v22 = vcombine.low %v247_v11, %v251_v12  ;;  %v310_v9 = vld [vmem:[#allocation2 + $0x840] sm:$0xff]  ;;  %v311_v12 = vld [vmem:[#allocation2 + $0x848] sm:$0xff] }
  0x6f   :  { %2469 = vmatprep.subr.bf16.mxu0 %v3111_v23  ;;  %2598 = vmatprep.subr.bf16.mxu1 %v3113_v24  ;;  %v3175_v23 = vcombine.high %v254_v17, %v258_v18  ;;  %v3177_v24 = vcombine.high %v255_v19, %v259_v20  ;;  %v314_v10 = vld [vmem:[#allocation2 + $0x860] sm:$0xff] }
  0x70   :  { %v3407_v11 = vld [vmem:[%s3597_s0 + $0x8] ss:$24 sps:$4 sm:$0xff]  }
  0x72   :  { %2470 = vmatpush1.bf16.msra.mxu0 %v3110_v29  ;;  %2599 = vmatpush1.bf16.msra.mxu1 %v3112_v30  ;;  %v3174_v29 = vcombine.low %v254_v17, %v258_v18  ;;  %v3176_v30 = vcombine.low %v255_v19, %v259_v20  ;;  %v318_v18 = vld [vmem:[#allocation2 + $0x880] sm:$0xff]  ;;  %v3408_v20 = vld [vmem:[%s3597_s0 + $0x14] ss:$24 sps:$4 sm:$0xff]  }
  0x73   :  { %2471 = vmatprep.subr.bf16.mxu0 %v3119_v31  ;;  %2600 = vmatprep.subr.bf16.mxu1 %v3121_v32  ;;  %v3183_v31 = vcombine.high %v262_v25, %v266_v26  ;;  %v3185_v32 = vcombine.high %v263_v27, %v267_v28  ;;  %v322_v19 = vld [vmem:[#allocation2 + $0x8a0] sm:$0xff] }
  0x76   :  { %2472 = vmatpush1.bf16.msra.mxu0 %v3118_v37  ;;  %2601 = vmatpush1.bf16.msra.mxu1 %v3120_v38  ;;  %v3182_v37 = vcombine.low %v262_v25, %v266_v26  ;;  %v3184_v38 = vcombine.low %v263_v27, %v267_v28  ;;  %v3239_v25 = vcombine.high %v318_v18, %v322_v19  ;;  %v326_v27 = vld [vmem:[#allocation2 + $0x8c0] sm:$0xff] }
  0x77   :  { %2473 = vmatprep.subr.bf16.mxu0 %v3127_v39  ;;  %2602 = vmatprep.subr.bf16.mxu1 %v3129_v40  ;;  %v3191_v39 = vcombine.high %v270_v33, %v274_v34  ;;  %v3193_v40 = vcombine.high %v271_v35, %v275_v36  ;;  %v330_v28 = vld [vmem:[#allocation2 + $0x8e0] sm:$0xff] }
  0x7a   :  { %2474 = vmatpush1.bf16.msra.mxu0 %v3126_v45  ;;  %2603 = vmatpush1.bf16.msra.mxu1 %v3128_v46  ;;  %v3190_v45 = vcombine.low %v270_v33, %v274_v34  ;;  %v3192_v46 = vcombine.low %v271_v35, %v275_v36  ;;  %v3247_v33 = vcombine.high %v326_v27, %v330_v28  ;;  %v334_v35 = vld [vmem:[#allocation2 + $0x900] sm:$0xff] }
  0x7b   :  { %2475 = vmatprep.subr.bf16.mxu0 %v3135_v47  ;;  %2604 = vmatprep.subr.bf16.mxu1 %v3137_v48  ;;  %v3199_v47 = vcombine.high %v278_v41, %v282_v42  ;;  %v3201_v48 = vcombine.high %v279_v43, %v283_v44  ;;  %v338_v36 = vld [vmem:[#allocation2 + $0x920] sm:$0xff] }
  0x7e   :  { %2476 = vmatpush1.bf16.msra.mxu0 %v3134_v53  ;;  %2605 = vmatpush1.bf16.msra.mxu1 %v3136_v54  ;;  %v3198_v53 = vcombine.low %v278_v41, %v282_v42  ;;  %v3200_v54 = vcombine.low %v279_v43, %v283_v44  ;;  %v3255_v41 = vcombine.high %v334_v35, %v338_v36  ;;  %v342_v43 = vld [vmem:[#allocation2 + $0x940] sm:$0xff] }
  0x7f   :  { %2477 = vmatprep.subr.bf16.mxu0 %v3143_v55  ;;  %2606 = vmatprep.subr.bf16.mxu1 %v3145_v56  ;;  %v3207_v55 = vcombine.high %v286_v49, %v290_v50  ;;  %v3209_v56 = vcombine.high %v287_v51, %v291_v52  ;;  %v346_v44 = vld [vmem:[#allocation2 + $0x960] sm:$0xff] }
  0x82   :  { %2478 = vmatpush1.bf16.msra.mxu0 %v3142_v61  ;;  %2607 = vmatpush1.bf16.msra.mxu1 %v3144_v62  ;;  %v3206_v61 = vcombine.low %v286_v49, %v290_v50  ;;  %v3208_v62 = vcombine.low %v287_v51, %v291_v52  ;;  %v3263_v49 = vcombine.high %v342_v43, %v346_v44  ;;  %v350_v51 = vld [vmem:[#allocation2 + $0x980] sm:$0xff] }
  0x83   :  { %2479 = vmatprep.subr.bf16.mxu0 %v3151_v63  ;;  %2608 = vmatprep.subr.bf16.mxu1 %v3153_v0  ;;  %v3215_v63 = vcombine.high %v294_v57, %v298_v58  ;;  %v3217_v0 = vcombine.high %v295_v59, %v299_v60  ;;  %v354_v52 = vld [vmem:[#allocation2 + $0x9a0] sm:$0xff] }
  0x86   :  { %2480 = vmatpush1.bf16.msra.mxu0 %v3150_v5  ;;  %2609 = vmatpush1.bf16.msra.mxu1 %v3152_v6  ;;  %v3214_v5 = vcombine.low %v294_v57, %v298_v58  ;;  %v3216_v6 = vcombine.low %v295_v59, %v299_v60  ;;  %v3271_v57 = vcombine.high %v350_v51, %v354_v52  ;;  %v358_v59 = vld [vmem:[#allocation2 + $0x9c0] sm:$0xff] }
  0x87   :  { %2481 = vmatprep.subr.bf16.mxu0 %v3159_v7  ;;  %2610 = vmatprep.subr.bf16.mxu1 %v3161_v8  ;;  %v3223_v7 = vcombine.high %v302_v1, %v306_v2  ;;  %v3225_v8 = vcombine.high %v303_v3, %v307_v4  ;;  %v362_v60 = vld [vmem:[#allocation2 + $0x9e0] sm:$0xff] }
  0x8a   :  { %2482 = vmatpush1.bf16.msra.mxu0 %v3158_v13  ;;  %2611 = vmatpush1.bf16.msra.mxu1 %v3160_v14  ;;  %v315_v13 = vld [vmem:[#allocation2 + $0x868] sm:$0xff]  ;;  %v3222_v14 = vcombine.low %v302_v1, %v306_v2  ;;  %v3279_v1 = vcombine.high %v358_v59, %v362_v60 }
  0x8b   :  { %2483 = vmatprep.subr.bf16.mxu0 %v3167_v15  ;;  %2612 = vmatprep.subr.bf16.mxu1 %v3169_v16  ;;  %v3224_v15 = vcombine.low %v303_v3, %v307_v4  ;;  %v3231_v16 = vcombine.high %v310_v9, %v314_v10  ;;  %v3233_v17 = vcombine.high %v311_v12, %v315_v13  ;;  %v366_v3 = vld [vmem:[#allocation2 + $0xa00] sm:$0xff] }
  0x8c   :  { %v370_v4 = vld [vmem:[#allocation2 + $0xa20] sm:$0xff] }
  0x8e   :  { %2484 = vmatpush1.bf16.msra.mxu0 %v3166_v21  ;;  %2613 = vmatpush1.bf16.msra.mxu1 %v3168_v22  ;;  %v319_v21 = vld [vmem:[#allocation2 + $0x888] sm:$0xff] }
  0x8f   :  { %2485 = vmatprep.subr.bf16.mxu0 %v3175_v23  ;;  %2614 = vmatprep.subr.bf16.mxu1 %v3177_v24  ;;  %v323_v22 = vld [vmem:[#allocation2 + $0x8a8] sm:$0xff]  ;;  %v3230_v23 = vcombine.low %v310_v9, %v314_v10  ;;  %v3232_v24 = vcombine.low %v311_v12, %v315_v13  ;;  %v3287_v9 = vcombine.high %v366_v3, %v370_v4  ;;  %v378_v12 = vld [vmem:[#allocation2 + $0xa60] sm:$0xff] }
  0x90   :  { %v3241_v26 = vcombine.high %v319_v21, %v323_v22  ;;  %v375_v13 = vld [vmem:[#allocation2 + $0xa48] sm:$0xff] }
  0x92   :  { %2486 = vmatpush1.bf16.msra.mxu0 %v3174_v29  ;;  %2615 = vmatpush1.bf16.msra.mxu1 %v3176_v30  ;;  %v327_v29 = vld [vmem:[#allocation2 + $0x8c8] sm:$0xff] }
  0x93   :  { %2487 = vmatprep.subr.bf16.mxu0 %v3183_v31  ;;  %2616 = vmatprep.subr.bf16.mxu1 %v3185_v32  ;;  %v331_v30 = vld [vmem:[#allocation2 + $0x8e8] sm:$0xff]  ;;  %v3238_v31 = vcombine.low %v318_v18, %v322_v19  ;;  %v3240_v32 = vcombine.low %v319_v21, %v323_v22  ;;  %v382_v19 = vld [vmem:[#allocation2 + $0xa80] sm:$0xff] }
  0x94   :  { %v3249_v34 = vcombine.high %v327_v29, %v331_v30  ;;  %v383_v21 = vld [vmem:[#allocation2 + $0xa88] sm:$0xff] }
  0x95   :  { %v387_v22 = vld [vmem:[#allocation2 + $0xaa8] sm:$0xff] }
  0x96   :  { %2488 = vmatpush1.bf16.msra.mxu0 %v3182_v37  ;;  %2617 = vmatpush1.bf16.msra.mxu1 %v3184_v38  ;;  %v335_v37 = vld [vmem:[#allocation2 + $0x908] sm:$0xff] }
  0x97   :  { %2489 = vmatprep.subr.bf16.mxu0 %v3191_v39  ;;  %2618 = vmatprep.subr.bf16.mxu1 %v3193_v40  ;;  %v339_v38 = vld [vmem:[#allocation2 + $0x928] sm:$0xff]  ;;  %v3246_v39 = vcombine.low %v326_v27, %v330_v28  ;;  %v3248_v40 = vcombine.low %v327_v29, %v331_v30  ;;  %v390_v27 = vld [vmem:[#allocation2 + $0xac0] sm:$0xff] }
  0x98   :  { %v3257_v42 = vcombine.high %v335_v37, %v339_v38  ;;  %v394_v28 = vld [vmem:[#allocation2 + $0xae0] sm:$0xff]  ;;  %v391_v29 = vld [vmem:[#allocation2 + $0xac8] sm:$0xff] }
  0x99   :  { %v395_v30 = vld [vmem:[#allocation2 + $0xae8] sm:$0xff] }
  0x9a   :  { %2490 = vmatpush1.bf16.msra.mxu0 %v3190_v45  ;;  %2619 = vmatpush1.bf16.msra.mxu1 %v3192_v46  ;;  %v343_v45 = vld [vmem:[#allocation2 + $0x948] sm:$0xff] }
  0x9b   :  { %2491 = vmatprep.subr.bf16.mxu0 %v3199_v47  ;;  %2620 = vmatprep.subr.bf16.mxu1 %v3201_v48  ;;  %v347_v46 = vld [vmem:[#allocation2 + $0x968] sm:$0xff]  ;;  %v3254_v47 = vcombine.low %v334_v35, %v338_v36  ;;  %v3256_v48 = vcombine.low %v335_v37, %v339_v38  ;;  %v398_v35 = vld [vmem:[#allocation2 + $0xb00] sm:$0xff] }
  0x9c   :  { %v3265_v50 = vcombine.high %v343_v45, %v347_v46  ;;  %v402_v36 = vld [vmem:[#allocation2 + $0xb20] sm:$0xff]  ;;  %v399_v37 = vld [vmem:[#allocation2 + $0xb08] sm:$0xff] }
  0x9d   :  { %v403_v38 = vld [vmem:[#allocation2 + $0xb28] sm:$0xff] }
  0x9e   :  { %2492 = vmatpush1.bf16.msra.mxu0 %v3198_v53  ;;  %2621 = vmatpush1.bf16.msra.mxu1 %v3200_v54  ;;  %v351_v53 = vld [vmem:[#allocation2 + $0x988] sm:$0xff] }
  0x9f   :  { %2493 = vmatprep.subr.bf16.mxu0 %v3207_v55  ;;  %2622 = vmatprep.subr.bf16.mxu1 %v3209_v56  ;;  %v355_v54 = vld [vmem:[#allocation2 + $0x9a8] sm:$0xff]  ;;  %v3262_v55 = vcombine.low %v342_v43, %v346_v44  ;;  %v3264_v56 = vcombine.low %v343_v45, %v347_v46  ;;  %v406_v43 = vld [vmem:[#allocation2 + $0xb40] sm:$0xff] }
  0xa0   :  { %v3273_v58 = vcombine.high %v351_v53, %v355_v54  ;;  %v410_v44 = vld [vmem:[#allocation2 + $0xb60] sm:$0xff]  ;;  %v407_v45 = vld [vmem:[#allocation2 + $0xb48] sm:$0xff] }
  0xa1   :  { %v411_v46 = vld [vmem:[#allocation2 + $0xb68] sm:$0xff] }
  0xa2   :  { %2494 = vmatpush1.bf16.msra.mxu0 %v3206_v61  ;;  %2623 = vmatpush1.bf16.msra.mxu1 %v3208_v62  ;;  %v359_v61 = vld [vmem:[#allocation2 + $0x9c8] sm:$0xff] }
  0xa3   :  { %2495 = vmatprep.subr.bf16.mxu0 %v3215_v63  ;;  %2624 = vmatprep.subr.bf16.mxu1 %v3217_v0  ;;  %v363_v62 = vld [vmem:[#allocation2 + $0x9e8] sm:$0xff]  ;;  %v3270_v63 = vcombine.low %v350_v51, %v354_v52  ;;  %v3272_v0 = vcombine.low %v351_v53, %v355_v54  ;;  %v414_v51 = vld [vmem:[#allocation2 + $0xb80] sm:$0xff] }
  0xa4   :  { %v3281_v2 = vcombine.high %v359_v61, %v363_v62  ;;  %v418_v52 = vld [vmem:[#allocation2 + $0xba0] sm:$0xff]  ;;  %v415_v53 = vld [vmem:[#allocation2 + $0xb88] sm:$0xff] }
  0xa5   :  { %v419_v54 = vld [vmem:[#allocation2 + $0xba8] sm:$0xff] }
  0xa6   :  { %2496 = vmatpush1.bf16.msra.mxu0 %v3214_v5  ;;  %2625 = vmatpush1.bf16.msra.mxu1 %v3216_v6  ;;  %v367_v5 = vld [vmem:[#allocation2 + $0xa08] sm:$0xff] }
  0xa7   :  { %2508 = vmatprep.subr.bf16.mxu0 %v3223_v7  ;;  %2637 = vmatprep.subr.bf16.mxu1 %v3225_v8  ;;  %v371_v6 = vld [vmem:[#allocation2 + $0xa28] sm:$0xff]  ;;  %v3278_v7 = vcombine.low %v358_v59, %v362_v60  ;;  %v3280_v8 = vcombine.low %v359_v61, %v363_v62  ;;  %v422_v59 = vld [vmem:[#allocation2 + $0xbc0] sm:$0xff] }
  0xa8   :  { %v3289_v10 = vcombine.high %v367_v5, %v371_v6  ;;  %v426_v60 = vld [vmem:[#allocation2 + $0xbe0] sm:$0xff]  ;;  %v423_v61 = vld [vmem:[#allocation2 + $0xbc8] sm:$0xff] }
  0xa9   :  { %2498 = vmatmul.mubr.bf16.vlgmr.msra.gmra.mrb[0].mxu0 %v3407_v11  ;;  %2627 = vmatmul.mubr.bf16.vlgmr.msra.gmra.mrb[0].mxu1 %v3407_v11  ;;  %v374_v11 = vld [vmem:[#allocation2 + $0xa40] sm:$0xff]  ;;  %v427_v62 = vld [vmem:[#allocation2 + $0xbe8] sm:$0xff] }
  0xaa   :  { %2509 = vmatpush1.bf16.msra.mxu0 %v3222_v14  ;;  %2638 = vmatpush1.bf16.msra.mxu1 %v3224_v15  ;;  %v379_v14 = vld [vmem:[#allocation2 + $0xa68] sm:$0xff]  ;;  %v3286_v15 = vcombine.low %v366_v3, %v370_v4  ;;  %v48_v3 = vld [vmem:[#allocation2 + $0x10] sm:$0xff] }
  0xab   :  { %2510 = vmatprep.subr.bf16.mxu0 %v3231_v16  ;;  %2639 = vmatprep.subr.bf16.mxu1 %v3233_v17  ;;  %v3288_v16 = vcombine.low %v367_v5, %v371_v6  ;;  %v3295_v17 = vcombine.high %v374_v11, %v378_v12  ;;  %v3297_v18 = vcombine.high %v375_v13, %v379_v14  ;;  %v52_v4 = vld [vmem:[#allocation2 + $0x30] sm:$0xff]  ;;  %v49_v5 = vld [vmem:[#allocation2 + $0x18] sm:$0xff] }
  0xac   :  { %2540 = vmatprep.mubr.bf16.mxu0 %v3408_v20  ;;  %2669 = vmatprep.mubr.bf16.mxu1 %v3408_v20  ;;  %v386_v20 = vld [vmem:[#allocation2 + $0xaa0] sm:$0xff]  ;;  %v53_v6 = vld [vmem:[#allocation2 + $0x38] sm:$0xff] }
  0xae   :  { %2511 = vmatpush1.bf16.msra.mxu0 %v3230_v23  ;;  %2640 = vmatpush1.bf16.msra.mxu1 %v3232_v24  ;;  %v3294_v23 = vcombine.low %v374_v11, %v378_v12  ;;  %v3296_v24 = vcombine.low %v375_v13, %v379_v14  ;;  %v56_v11 = vld [vmem:[#allocation2 + $0x50] sm:$0xff]  ;;  %v57_v14 = vld [vmem:[#allocation2 + $0x58] sm:$0xff] }
  0xaf   :  { %2512 = vmatprep.subr.bf16.mxu0 %v3239_v25  ;;  %2641 = vmatprep.subr.bf16.mxu1 %v3241_v26  ;;  %v3303_v25 = vcombine.high %v382_v19, %v386_v20  ;;  %v3305_v26 = vcombine.high %v383_v21, %v387_v22  ;;  %v60_v12 = vld [vmem:[#allocation2 + $0x70] sm:$0xff] }
  0xb0   :  { %v3410_v13 = vld [vmem:[%s3597_s0 + $0x10] ss:$24 sps:$4 sm:$0xff]  }
  0xb2   :  { %2513 = vmatpush1.bf16.msra.mxu0 %v3238_v31  ;;  %2642 = vmatpush1.bf16.msra.mxu1 %v3240_v32  ;;  %v3302_v31 = vcombine.low %v382_v19, %v386_v20  ;;  %v3304_v32 = vcombine.low %v383_v21, %v387_v22  ;;  %v64_v20 = vld [vmem:[#allocation2 + $0x90] sm:$0xff]  ;;  %v65_v22 = vld [vmem:[#allocation2 + $0x98] sm:$0xff] }
  0xb3   :  { %2514 = vmatprep.subr.bf16.mxu0 %v3247_v33  ;;  %2643 = vmatprep.subr.bf16.mxu1 %v3249_v34  ;;  %v3311_v33 = vcombine.high %v390_v27, %v394_v28  ;;  %v3313_v34 = vcombine.high %v391_v29, %v395_v30  ;;  %v68_v21 = vld [vmem:[#allocation2 + $0xb0] sm:$0xff] }
  0xb6   :  { %2515 = vmatpush1.bf16.msra.mxu0 %v3246_v39  ;;  %2644 = vmatpush1.bf16.msra.mxu1 %v3248_v40  ;;  %v3310_v39 = vcombine.low %v390_v27, %v394_v28  ;;  %v3312_v40 = vcombine.low %v391_v29, %v395_v30  ;;  %v72_v28 = vld [vmem:[#allocation2 + $0xd0] sm:$0xff]  ;;  %v3411_v30 = vld [vmem:[%s3597_s0 + $0x4] ss:$24 sps:$4 sm:$0xff]  }
  0xb7   :  { %2516 = vmatprep.subr.bf16.mxu0 %v3255_v41  ;;  %2645 = vmatprep.subr.bf16.mxu1 %v3257_v42  ;;  %v3319_v41 = vcombine.high %v398_v35, %v402_v36  ;;  %v3321_v42 = vcombine.high %v399_v37, %v403_v38  ;;  %v76_v29 = vld [vmem:[#allocation2 + $0xf0] sm:$0xff] }
  0xba   :  { %2517 = vmatpush1.bf16.msra.mxu0 %v3254_v47  ;;  %2646 = vmatpush1.bf16.msra.mxu1 %v3256_v48  ;;  %v3318_v47 = vcombine.low %v398_v35, %v402_v36  ;;  %v3320_v48 = vcombine.low %v399_v37, %v403_v38  ;;  %v2995_v35 = vcombine.high %v72_v28, %v76_v29  ;;  %v80_v37 = vld [vmem:[#allocation2 + $0x110] sm:$0xff] }
  0xbb   :  { %2518 = vmatprep.subr.bf16.mxu0 %v3263_v49  ;;  %2647 = vmatprep.subr.bf16.mxu1 %v3265_v50  ;;  %v3327_v49 = vcombine.high %v406_v43, %v410_v44  ;;  %v3329_v50 = vcombine.high %v407_v45, %v411_v46  ;;  %v84_v38 = vld [vmem:[#allocation2 + $0x130] sm:$0xff] }
  0xbe   :  { %2519 = vmatpush1.bf16.msra.mxu0 %v3262_v55  ;;  %2648 = vmatpush1.bf16.msra.mxu1 %v3264_v56  ;;  %v3326_v55 = vcombine.low %v406_v43, %v410_v44  ;;  %v3328_v56 = vcombine.low %v407_v45, %v411_v46  ;;  %v3003_v43 = vcombine.high %v80_v37, %v84_v38  ;;  %v88_v45 = vld [vmem:[#allocation2 + $0x150] sm:$0xff] }
  0xbf   :  { %2520 = vmatprep.subr.bf16.mxu0 %v3271_v57  ;;  %2649 = vmatprep.subr.bf16.mxu1 %v3273_v58  ;;  %v3335_v57 = vcombine.high %v414_v51, %v418_v52  ;;  %v3337_v58 = vcombine.high %v415_v53, %v419_v54  ;;  %v92_v46 = vld [vmem:[#allocation2 + $0x170] sm:$0xff] }
  0xc2   :  { %2521 = vmatpush1.bf16.msra.mxu0 %v3270_v63  ;;  %2650 = vmatpush1.bf16.msra.mxu1 %v3272_v0  ;;  %v3334_v63 = vcombine.low %v414_v51, %v418_v52  ;;  %v3336_v0 = vcombine.low %v415_v53, %v419_v54  ;;  %v3011_v51 = vcombine.high %v88_v45, %v92_v46  ;;  %v96_v53 = vld [vmem:[#allocation2 + $0x190] sm:$0xff] }
  0xc3   :  { %2522 = vmatprep.subr.bf16.mxu0 %v3279_v1  ;;  %2651 = vmatprep.subr.bf16.mxu1 %v3281_v2  ;;  %v3343_v1 = vcombine.high %v422_v59, %v426_v60  ;;  %v3345_v2 = vcombine.high %v423_v61, %v427_v62  ;;  %v100_v54 = vld [vmem:[#allocation2 + $0x1b0] sm:$0xff] }
  0xc6   :  { %2523 = vmatpush1.bf16.msra.mxu0 %v3278_v7  ;;  %2652 = vmatpush1.bf16.msra.mxu1 %v3280_v8  ;;  %v3342_v7 = vcombine.low %v422_v59, %v426_v60  ;;  %v3344_v8 = vcombine.low %v423_v61, %v427_v62  ;;  %v3019_v59 = vcombine.high %v96_v53, %v100_v54  ;;  %v104_v61 = vld [vmem:[#allocation2 + $0x1d0] sm:$0xff] }
  0xc7   :  { %2524 = vmatprep.subr.bf16.mxu0 %v3287_v9  ;;  %2653 = vmatprep.subr.bf16.mxu1 %v3289_v10  ;;  %v2971_v9 = vcombine.high %v48_v3, %v52_v4  ;;  %v2973_v10 = vcombine.high %v49_v5, %v53_v6  ;;  %v108_v62 = vld [vmem:[#allocation2 + $0x1f0] sm:$0xff] }
  0xca   :  { %2525 = vmatpush1.bf16.msra.mxu0 %v3286_v15  ;;  %2654 = vmatpush1.bf16.msra.mxu1 %v3288_v16  ;;  %v61_v15 = vld [vmem:[#allocation2 + $0x78] sm:$0xff]  ;;  %v2970_v16 = vcombine.low %v48_v3, %v52_v4  ;;  %v3027_v3 = vcombine.high %v104_v61, %v108_v62 }
  0xcb   :  { %2526 = vmatprep.subr.bf16.mxu0 %v3295_v17  ;;  %2655 = vmatprep.subr.bf16.mxu1 %v3297_v18  ;;  %v2972_v17 = vcombine.low %v49_v5, %v53_v6  ;;  %v2979_v18 = vcombine.high %v56_v11, %v60_v12  ;;  %v2981_v19 = vcombine.high %v57_v14, %v61_v15  ;;  %v112_v5 = vld [vmem:[#allocation2 + $0x210] sm:$0xff] }
  0xcc   :  { %v116_v6 = vld [vmem:[#allocation2 + $0x230] sm:$0xff] }
  0xce   :  { %2527 = vmatpush1.bf16.msra.mxu0 %v3294_v23  ;;  %2656 = vmatpush1.bf16.msra.mxu1 %v3296_v24  ;;  %v69_v23 = vld [vmem:[#allocation2 + $0xb8] sm:$0xff]  ;;  %v2978_v24 = vcombine.low %v56_v11, %v60_v12  ;;  %v3035_v11 = vcombine.high %v112_v5, %v116_v6 }
  0xcf   :  { %2528 = vmatprep.subr.bf16.mxu0 %v3303_v25  ;;  %2657 = vmatprep.subr.bf16.mxu1 %v3305_v26  ;;  %v2980_v25 = vcombine.low %v57_v14, %v61_v15  ;;  %v2987_v26 = vcombine.high %v64_v20, %v68_v21  ;;  %v2989_v27 = vcombine.high %v65_v22, %v69_v23  ;;  %v124_v14 = vld [vmem:[#allocation2 + $0x270] sm:$0xff]  ;;  %v121_v15 = vld [vmem:[#allocation2 + $0x258] sm:$0xff] }
  0xd2   :  { %2529 = vmatpush1.bf16.msra.mxu0 %v3302_v31  ;;  %2658 = vmatpush1.bf16.msra.mxu1 %v3304_v32  ;;  %v73_v31 = vld [vmem:[#allocation2 + $0xd8] sm:$0xff] }
  0xd3   :  { %2530 = vmatprep.subr.bf16.mxu0 %v3311_v33  ;;  %2659 = vmatprep.subr.bf16.mxu1 %v3313_v34  ;;  %v77_v32 = vld [vmem:[#allocation2 + $0xf8] sm:$0xff]  ;;  %v2986_v33 = vcombine.low %v64_v20, %v68_v21  ;;  %v2988_v34 = vcombine.low %v65_v22, %v69_v23  ;;  %v128_v21 = vld [vmem:[#allocation2 + $0x290] sm:$0xff] }
  0xd4   :  { %v2997_v36 = vcombine.high %v73_v31, %v77_v32  ;;  %v132_v22 = vld [vmem:[#allocation2 + $0x2b0] sm:$0xff]  ;;  %v129_v23 = vld [vmem:[#allocation2 + $0x298] sm:$0xff] }
  0xd6   :  { %2531 = vmatpush1.bf16.msra.mxu0 %v3310_v39  ;;  %2660 = vmatpush1.bf16.msra.mxu1 %v3312_v40  ;;  %v81_v39 = vld [vmem:[#allocation2 + $0x118] sm:$0xff] }
  0xd7   :  { %2532 = vmatprep.subr.bf16.mxu0 %v3319_v41  ;;  %2661 = vmatprep.subr.bf16.mxu1 %v3321_v42  ;;  %v85_v40 = vld [vmem:[#allocation2 + $0x138] sm:$0xff]  ;;  %v2994_v41 = vcombine.low %v72_v28, %v76_v29  ;;  %v2996_v42 = vcombine.low %v73_v31, %v77_v32  ;;  %v136_v29 = vld [vmem:[#allocation2 + $0x2d0] sm:$0xff] }
  0xd8   :  { %v3005_v44 = vcombine.high %v81_v39, %v85_v40  ;;  %v137_v31 = vld [vmem:[#allocation2 + $0x2d8] sm:$0xff] }
  0xd9   :  { %v141_v32 = vld [vmem:[#allocation2 + $0x2f8] sm:$0xff] }
  0xda   :  { %2533 = vmatpush1.bf16.msra.mxu0 %v3318_v47  ;;  %2662 = vmatpush1.bf16.msra.mxu1 %v3320_v48  ;;  %v89_v47 = vld [vmem:[#allocation2 + $0x158] sm:$0xff] }
  0xdb   :  { %2534 = vmatprep.subr.bf16.mxu0 %v3327_v49  ;;  %2663 = vmatprep.subr.bf16.mxu1 %v3329_v50  ;;  %v93_v48 = vld [vmem:[#allocation2 + $0x178] sm:$0xff]  ;;  %v3002_v49 = vcombine.low %v80_v37, %v84_v38  ;;  %v3004_v50 = vcombine.low %v81_v39, %v85_v40  ;;  %v144_v37 = vld [vmem:[#allocation2 + $0x310] sm:$0xff] }
  0xdc   :  { %v3013_v52 = vcombine.high %v89_v47, %v93_v48  ;;  %v148_v38 = vld [vmem:[#allocation2 + $0x330] sm:$0xff]  ;;  %v145_v39 = vld [vmem:[#allocation2 + $0x318] sm:$0xff] }
  0xdd   :  { %v149_v40 = vld [vmem:[#allocation2 + $0x338] sm:$0xff] }
  0xde   :  { %2535 = vmatpush1.bf16.msra.mxu0 %v3326_v55  ;;  %2664 = vmatpush1.bf16.msra.mxu1 %v3328_v56  ;;  %v97_v55 = vld [vmem:[#allocation2 + $0x198] sm:$0xff] }
  0xdf   :  { %2536 = vmatprep.subr.bf16.mxu0 %v3335_v57  ;;  %2665 = vmatprep.subr.bf16.mxu1 %v3337_v58  ;;  %v101_v56 = vld [vmem:[#allocation2 + $0x1b8] sm:$0xff]  ;;  %v3010_v57 = vcombine.low %v88_v45, %v92_v46  ;;  %v3012_v58 = vcombine.low %v89_v47, %v93_v48  ;;  %v152_v45 = vld [vmem:[#allocation2 + $0x350] sm:$0xff] }
  0xe0   :  { %v3021_v60 = vcombine.high %v97_v55, %v101_v56  ;;  %v156_v46 = vld [vmem:[#allocation2 + $0x370] sm:$0xff]  ;;  %v153_v47 = vld [vmem:[#allocation2 + $0x358] sm:$0xff] }
  0xe1   :  { %v157_v48 = vld [vmem:[#allocation2 + $0x378] sm:$0xff] }
  0xe2   :  { %2537 = vmatpush1.bf16.msra.mxu0 %v3334_v63  ;;  %2666 = vmatpush1.bf16.msra.mxu1 %v3336_v0  ;;  %v105_v63 = vld [vmem:[#allocation2 + $0x1d8] sm:$0xff] }
  0xe3   :  { %2538 = vmatprep.subr.bf16.mxu0 %v3343_v1  ;;  %2667 = vmatprep.subr.bf16.mxu1 %v3345_v2  ;;  %v109_v0 = vld [vmem:[#allocation2 + $0x1f8] sm:$0xff]  ;;  %v3018_v1 = vcombine.low %v96_v53, %v100_v54  ;;  %v3020_v2 = vcombine.low %v97_v55, %v101_v56  ;;  %v160_v53 = vld [vmem:[#allocation2 + $0x390] sm:$0xff] }
  0xe4   :  { %v3029_v4 = vcombine.high %v105_v63, %v109_v0  ;;  %v164_v54 = vld [vmem:[#allocation2 + $0x3b0] sm:$0xff]  ;;  %v161_v55 = vld [vmem:[#allocation2 + $0x398] sm:$0xff] }
  0xe5   :  { %v165_v56 = vld [vmem:[#allocation2 + $0x3b8] sm:$0xff] }
  0xe6   :  { %2539 = vmatpush1.bf16.msra.mxu0 %v3342_v7  ;;  %2668 = vmatpush1.bf16.msra.mxu1 %v3344_v8  ;;  %v113_v7 = vld [vmem:[#allocation2 + $0x218] sm:$0xff] }
  0xe7   :  { %2680 = vmatprep.subr.bf16.mxu0 %v2971_v9  ;;  %2809 = vmatprep.subr.bf16.mxu1 %v2973_v10  ;;  %v117_v8 = vld [vmem:[#allocation2 + $0x238] sm:$0xff]  ;;  %v3026_v9 = vcombine.low %v104_v61, %v108_v62  ;;  %v3028_v10 = vcombine.low %v105_v63, %v109_v0  ;;  %v168_v61 = vld [vmem:[#allocation2 + $0x3d0] sm:$0xff] }
  0xe8   :  { %v3037_v12 = vcombine.high %v113_v7, %v117_v8  ;;  %v172_v62 = vld [vmem:[#allocation2 + $0x3f0] sm:$0xff]  ;;  %v169_v63 = vld [vmem:[#allocation2 + $0x3d8] sm:$0xff] }
  0xe9   :  { %2541 = vmatmul.mubr.bf16.vlgmr.msra.gmra.mrb[0].mxu0 %v3410_v13  ;;  %2670 = vmatmul.mubr.bf16.vlgmr.msra.gmra.mrb[0].mxu1 %v3410_v13  ;;  %v120_v13 = vld [vmem:[#allocation2 + $0x250] sm:$0xff]  ;;  %v173_v0 = vld [vmem:[#allocation2 + $0x3f8] sm:$0xff] }
  0xea   :  { %2681 = vmatpush1.bf16.msra.mxu0 %v2970_v16  ;;  %2810 = vmatpush1.bf16.msra.mxu1 %v2972_v17  ;;  %v125_v16 = vld [vmem:[#allocation2 + $0x278] sm:$0xff]  ;;  %v3034_v17 = vcombine.low %v112_v5, %v116_v6  ;;  %v176_v5 = vld [vmem:[#allocation2 + $0x410] sm:$0xff] }
  0xeb   :  { %2682 = vmatprep.subr.bf16.mxu0 %v2979_v18  ;;  %2811 = vmatprep.subr.bf16.mxu1 %v2981_v19  ;;  %v3036_v18 = vcombine.low %v113_v7, %v117_v8  ;;  %v3043_v19 = vcombine.high %v120_v13, %v124_v14  ;;  %v3045_v20 = vcombine.high %v121_v15, %v125_v16  ;;  %v180_v6 = vld [vmem:[#allocation2 + $0x430] sm:$0xff]  ;;  %v177_v7 = vld [vmem:[#allocation2 + $0x418] sm:$0xff] }
  0xec   :  { %2712 = vmatprep.mubr.bf16.mxu0 %v3411_v30  ;;  %2841 = vmatprep.mubr.bf16.mxu1 %v3411_v30  ;;  %v140_v30 = vld [vmem:[#allocation2 + $0x2f0] sm:$0xff]  ;;  %v181_v8 = vld [vmem:[#allocation2 + $0x438] sm:$0xff] }
  0xee   :  { %2683 = vmatpush1.bf16.msra.mxu0 %v2978_v24  ;;  %2812 = vmatpush1.bf16.msra.mxu1 %v2980_v25  ;;  %v133_v24 = vld [vmem:[#allocation2 + $0x2b8] sm:$0xff]  ;;  %v3042_v25 = vcombine.low %v120_v13, %v124_v14  ;;  %v184_v13 = vld [vmem:[#allocation2 + $0x450] sm:$0xff] }
  0xef   :  { %2684 = vmatprep.subr.bf16.mxu0 %v2987_v26  ;;  %2813 = vmatprep.subr.bf16.mxu1 %v2989_v27  ;;  %v3044_v26 = vcombine.low %v121_v15, %v125_v16  ;;  %v3051_v27 = vcombine.high %v128_v21, %v132_v22  ;;  %v3053_v28 = vcombine.high %v129_v23, %v133_v24  ;;  %v188_v14 = vld [vmem:[#allocation2 + $0x470] sm:$0xff]  ;;  %v185_v15 = vld [vmem:[#allocation2 + $0x458] sm:$0xff] }
  0xf0   :  { %v189_v16 = vld [vmem:[#allocation2 + $0x478] sm:$0xff] }
  0xf2   :  { %2685 = vmatpush1.bf16.msra.mxu0 %v2986_v33  ;;  %2814 = vmatpush1.bf16.msra.mxu1 %v2988_v34  ;;  %v3050_v33 = vcombine.low %v128_v21, %v132_v22  ;;  %v3052_v34 = vcombine.low %v129_v23, %v133_v24  ;;  %v192_v21 = vld [vmem:[#allocation2 + $0x490] sm:$0xff]  ;;  %v3412_v23 = vld [vmem:[%s3597_s0] ss:$24 sps:$4 sm:$0xff]  }
  0xf3   :  { %2686 = vmatprep.subr.bf16.mxu0 %v2995_v35  ;;  %2815 = vmatprep.subr.bf16.mxu1 %v2997_v36  ;;  %v3059_v35 = vcombine.high %v136_v29, %v140_v30  ;;  %v3061_v36 = vcombine.high %v137_v31, %v141_v32  ;;  %v196_v22 = vld [vmem:[#allocation2 + $0x4b0] sm:$0xff]  ;;  %v193_v24 = vld [vmem:[#allocation2 + $0x498] sm:$0xff] }
  0xf6   :  { %2687 = vmatpush1.bf16.msra.mxu0 %v2994_v41  ;;  %2816 = vmatpush1.bf16.msra.mxu1 %v2996_v42  ;;  %v3058_v41 = vcombine.low %v136_v29, %v140_v30  ;;  %v3060_v42 = vcombine.low %v137_v31, %v141_v32  ;;  %v200_v30 = vld [vmem:[#allocation2 + $0x4d0] sm:$0xff]  ;;  %v3413_v32 = vld [vmem:[%s3597_s0 + $0xc] ss:$24 sps:$4 sm:$0xff]  }
  0xf7   :  { %2688 = vmatprep.subr.bf16.mxu0 %v3003_v43  ;;  %2817 = vmatprep.subr.bf16.mxu1 %v3005_v44  ;;  %v3067_v43 = vcombine.high %v144_v37, %v148_v38  ;;  %v3069_v44 = vcombine.high %v145_v39, %v149_v40  ;;  %v204_v31 = vld [vmem:[#allocation2 + $0x4f0] sm:$0xff] }
  0xfa   :  { %2689 = vmatpush1.bf16.msra.mxu0 %v3002_v49  ;;  %2818 = vmatpush1.bf16.msra.mxu1 %v3004_v50  ;;  %v3066_v49 = vcombine.low %v144_v37, %v148_v38  ;;  %v3068_v50 = vcombine.low %v145_v39, %v149_v40  ;;  %v3123_v37 = vcombine.high %v200_v30, %v204_v31  ;;  %v208_v39 = vld [vmem:[#allocation2 + $0x510] sm:$0xff] }
  0xfb   :  { %2690 = vmatprep.subr.bf16.mxu0 %v3011_v51  ;;  %2819 = vmatprep.subr.bf16.mxu1 %v3013_v52  ;;  %v3075_v51 = vcombine.high %v152_v45, %v156_v46  ;;  %v3077_v52 = vcombine.high %v153_v47, %v157_v48  ;;  %v212_v40 = vld [vmem:[#allocation2 + $0x530] sm:$0xff] }
  0xfe   :  { %2691 = vmatpush1.bf16.msra.mxu0 %v3010_v57  ;;  %2820 = vmatpush1.bf16.msra.mxu1 %v3012_v58  ;;  %v3074_v57 = vcombine.low %v152_v45, %v156_v46  ;;  %v3076_v58 = vcombine.low %v153_v47, %v157_v48  ;;  %v3131_v45 = vcombine.high %v208_v39, %v212_v40  ;;  %v216_v47 = vld [vmem:[#allocation2 + $0x550] sm:$0xff] }
  0xff   :  { %2692 = vmatprep.subr.bf16.mxu0 %v3019_v59  ;;  %2821 = vmatprep.subr.bf16.mxu1 %v3021_v60  ;;  %v3083_v59 = vcombine.high %v160_v53, %v164_v54  ;;  %v3085_v60 = vcombine.high %v161_v55, %v165_v56  ;;  %v220_v48 = vld [vmem:[#allocation2 + $0x570] sm:$0xff] }
 0x102   :  { %2693 = vmatpush1.bf16.msra.mxu0 %v3018_v1  ;;  %2822 = vmatpush1.bf16.msra.mxu1 %v3020_v2  ;;  %v3082_v1 = vcombine.low %v160_v53, %v164_v54  ;;  %v3084_v2 = vcombine.low %v161_v55, %v165_v56  ;;  %v3139_v53 = vcombine.high %v216_v47, %v220_v48  ;;  %v224_v55 = vld [vmem:[#allocation2 + $0x590] sm:$0xff] }
 0x103   :  { %2694 = vmatprep.subr.bf16.mxu0 %v3027_v3  ;;  %2823 = vmatprep.subr.bf16.mxu1 %v3029_v4  ;;  %v3091_v3 = vcombine.high %v168_v61, %v172_v62  ;;  %v3093_v4 = vcombine.high %v169_v63, %v173_v0  ;;  %v228_v56 = vld [vmem:[#allocation2 + $0x5b0] sm:$0xff] }
 0x106   :  { %2695 = vmatpush1.bf16.msra.mxu0 %v3026_v9  ;;  %2824 = vmatpush1.bf16.msra.mxu1 %v3028_v10  ;;  %v3090_v9 = vcombine.low %v168_v61, %v172_v62  ;;  %v3092_v10 = vcombine.low %v169_v63, %v173_v0  ;;  %v3147_v61 = vcombine.high %v224_v55, %v228_v56  ;;  %v232_v63 = vld [vmem:[#allocation2 + $0x5d0] sm:$0xff] }
 0x107   :  { %2696 = vmatprep.subr.bf16.mxu0 %v3035_v11  ;;  %2825 = vmatprep.subr.bf16.mxu1 %v3037_v12  ;;  %v3099_v11 = vcombine.high %v176_v5, %v180_v6  ;;  %v3101_v12 = vcombine.high %v177_v7, %v181_v8  ;;  %v236_v0 = vld [vmem:[#allocation2 + $0x5f0] sm:$0xff] }
 0x10a   :  { %2697 = vmatpush1.bf16.msra.mxu0 %v3034_v17  ;;  %2826 = vmatpush1.bf16.msra.mxu1 %v3036_v18  ;;  %v3098_v17 = vcombine.low %v176_v5, %v180_v6  ;;  %v3100_v18 = vcombine.low %v177_v7, %v181_v8  ;;  %v3155_v5 = vcombine.high %v232_v63, %v236_v0  ;;  %v240_v7 = vld [vmem:[#allocation2 + $0x610] sm:$0xff] }
 0x10b   :  { %2698 = vmatprep.subr.bf16.mxu0 %v3043_v19  ;;  %2827 = vmatprep.subr.bf16.mxu1 %v3045_v20  ;;  %v3107_v19 = vcombine.high %v184_v13, %v188_v14  ;;  %v3109_v20 = vcombine.high %v185_v15, %v189_v16  ;;  %v244_v8 = vld [vmem:[#allocation2 + $0x630] sm:$0xff] }
 0x10e   :  { %2699 = vmatpush1.bf16.msra.mxu0 %v3042_v25  ;;  %2828 = vmatpush1.bf16.msra.mxu1 %v3044_v26  ;;  %v197_v25 = vld [vmem:[#allocation2 + $0x4b8] sm:$0xff]  ;;  %v3106_v26 = vcombine.low %v184_v13, %v188_v14  ;;  %v3163_v13 = vcombine.high %v240_v7, %v244_v8 }
 0x10f   :  { %2700 = vmatprep.subr.bf16.mxu0 %v3051_v27  ;;  %2829 = vmatprep.subr.bf16.mxu1 %v3053_v28  ;;  %v3108_v27 = vcombine.low %v185_v15, %v189_v16  ;;  %v3115_v28 = vcombine.high %v192_v21, %v196_v22  ;;  %v3117_v29 = vcombine.high %v193_v24, %v197_v25  ;;  %v248_v15 = vld [vmem:[#allocation2 + $0x650] sm:$0xff] }
 0x110   :  { %v252_v16 = vld [vmem:[#allocation2 + $0x670] sm:$0xff] }
 0x112   :  { %2701 = vmatpush1.bf16.msra.mxu0 %v3050_v33  ;;  %2830 = vmatpush1.bf16.msra.mxu1 %v3052_v34  ;;  %v201_v33 = vld [vmem:[#allocation2 + $0x4d8] sm:$0xff] }
 0x113   :  { %2702 = vmatprep.subr.bf16.mxu0 %v3059_v35  ;;  %2831 = vmatprep.subr.bf16.mxu1 %v3061_v36  ;;  %v205_v34 = vld [vmem:[#allocation2 + $0x4f8] sm:$0xff]  ;;  %v3114_v35 = vcombine.low %v192_v21, %v196_v22  ;;  %v3116_v36 = vcombine.low %v193_v24, %v197_v25  ;;  %v3171_v21 = vcombine.high %v248_v15, %v252_v16  ;;  %v260_v24 = vld [vmem:[#allocation2 + $0x6b0] sm:$0xff] }
 0x114   :  { %v3125_v38 = vcombine.high %v201_v33, %v205_v34  ;;  %v257_v25 = vld [vmem:[#allocation2 + $0x698] sm:$0xff] }
 0x116   :  { %2703 = vmatpush1.bf16.msra.mxu0 %v3058_v41  ;;  %2832 = vmatpush1.bf16.msra.mxu1 %v3060_v42  ;;  %v209_v41 = vld [vmem:[#allocation2 + $0x518] sm:$0xff] }
 0x117   :  { %2704 = vmatprep.subr.bf16.mxu0 %v3067_v43  ;;  %2833 = vmatprep.subr.bf16.mxu1 %v3069_v44  ;;  %v213_v42 = vld [vmem:[#allocation2 + $0x538] sm:$0xff]  ;;  %v3122_v43 = vcombine.low %v200_v30, %v204_v31  ;;  %v3124_v44 = vcombine.low %v201_v33, %v205_v34  ;;  %v264_v31 = vld [vmem:[#allocation2 + $0x6d0] sm:$0xff] }
 0x118   :  { %v3133_v46 = vcombine.high %v209_v41, %v213_v42  ;;  %v265_v33 = vld [vmem:[#allocation2 + $0x6d8] sm:$0xff] }
 0x119   :  { %v269_v34 = vld [vmem:[#allocation2 + $0x6f8] sm:$0xff] }
 0x11a   :  { %2705 = vmatpush1.bf16.msra.mxu0 %v3066_v49  ;;  %2834 = vmatpush1.bf16.msra.mxu1 %v3068_v50  ;;  %v217_v49 = vld [vmem:[#allocation2 + $0x558] sm:$0xff] }
 0x11b   :  { %2706 = vmatprep.subr.bf16.mxu0 %v3075_v51  ;;  %2835 = vmatprep.subr.bf16.mxu1 %v3077_v52  ;;  %v221_v50 = vld [vmem:[#allocation2 + $0x578] sm:$0xff]  ;;  %v3130_v51 = vcombine.low %v208_v39, %v212_v40  ;;  %v3132_v52 = vcombine.low %v209_v41, %v213_v42  ;;  %v272_v39 = vld [vmem:[#allocation2 + $0x710] sm:$0xff] }
 0x11c   :  { %v3141_v54 = vcombine.high %v217_v49, %v221_v50  ;;  %v276_v40 = vld [vmem:[#allocation2 + $0x730] sm:$0xff]  ;;  %v273_v41 = vld [vmem:[#allocation2 + $0x718] sm:$0xff] }
 0x11d   :  { %v277_v42 = vld [vmem:[#allocation2 + $0x738] sm:$0xff] }
 0x11e   :  { %2707 = vmatpush1.bf16.msra.mxu0 %v3074_v57  ;;  %2836 = vmatpush1.bf16.msra.mxu1 %v3076_v58  ;;  %v225_v57 = vld [vmem:[#allocation2 + $0x598] sm:$0xff] }
 0x11f   :  { %2708 = vmatprep.subr.bf16.mxu0 %v3083_v59  ;;  %2837 = vmatprep.subr.bf16.mxu1 %v3085_v60  ;;  %v229_v58 = vld [vmem:[#allocation2 + $0x5b8] sm:$0xff]  ;;  %v3138_v59 = vcombine.low %v216_v47, %v220_v48  ;;  %v3140_v60 = vcombine.low %v217_v49, %v221_v50  ;;  %v280_v47 = vld [vmem:[#allocation2 + $0x750] sm:$0xff] }
 0x120   :  { %v3149_v62 = vcombine.high %v225_v57, %v229_v58  ;;  %v284_v48 = vld [vmem:[#allocation2 + $0x770] sm:$0xff]  ;;  %v281_v49 = vld [vmem:[#allocation2 + $0x758] sm:$0xff] }
 0x121   :  { %v285_v50 = vld [vmem:[#allocation2 + $0x778] sm:$0xff] }
 0x122   :  { %2709 = vmatpush1.bf16.msra.mxu0 %v3082_v1  ;;  %2838 = vmatpush1.bf16.msra.mxu1 %v3084_v2  ;;  %v233_v1 = vld [vmem:[#allocation2 + $0x5d8] sm:$0xff] }
 0x123   :  { %2710 = vmatprep.subr.bf16.mxu0 %v3091_v3  ;;  %2839 = vmatprep.subr.bf16.mxu1 %v3093_v4  ;;  %v237_v2 = vld [vmem:[#allocation2 + $0x5f8] sm:$0xff]  ;;  %v3146_v3 = vcombine.low %v224_v55, %v228_v56  ;;  %v3148_v4 = vcombine.low %v225_v57, %v229_v58  ;;  %v288_v55 = vld [vmem:[#allocation2 + $0x790] sm:$0xff] }
 0x124   :  { %v3157_v6 = vcombine.high %v233_v1, %v237_v2  ;;  %v292_v56 = vld [vmem:[#allocation2 + $0x7b0] sm:$0xff]  ;;  %v289_v57 = vld [vmem:[#allocation2 + $0x798] sm:$0xff] }
 0x125   :  { %v293_v58 = vld [vmem:[#allocation2 + $0x7b8] sm:$0xff] }
 0x126   :  { %2711 = vmatpush1.bf16.msra.mxu0 %v3090_v9  ;;  %2840 = vmatpush1.bf16.msra.mxu1 %v3092_v10  ;;  %v241_v9 = vld [vmem:[#allocation2 + $0x618] sm:$0xff] }
 0x127   :  { %2723 = vmatprep.subr.bf16.mxu0 %v3099_v11  ;;  %2852 = vmatprep.subr.bf16.mxu1 %v3101_v12  ;;  %v245_v10 = vld [vmem:[#allocation2 + $0x638] sm:$0xff]  ;;  %v3154_v11 = vcombine.low %v232_v63, %v236_v0  ;;  %v3156_v12 = vcombine.low %v233_v1, %v237_v2  ;;  %v296_v63 = vld [vmem:[#allocation2 + $0x7d0] sm:$0xff] }
 0x128   :  { %v3165_v14 = vcombine.high %v241_v9, %v245_v10  ;;  %v300_v0 = vld [vmem:[#allocation2 + $0x7f0] sm:$0xff]  ;;  %v297_v1 = vld [vmem:[#allocation2 + $0x7d8] sm:$0xff] }
 0x129   :  { %2713 = vmatmul.mubr.bf16.vlgmr.msra.gmra.mrb[4].mxu0 %v3412_v23  ;;  %2842 = vmatmul.mubr.bf16.vlgmr.msra.gmra.mrb[4].mxu1 %v3412_v23  ;;  %v256_v23 = vld [vmem:[#allocation2 + $0x690] sm:$0xff]  ;;  %v301_v2 = vld [vmem:[#allocation2 + $0x7f8] sm:$0xff] }
 0x12a   :  { %2724 = vmatpush1.bf16.msra.mxu0 %v3098_v17  ;;  %2853 = vmatpush1.bf16.msra.mxu1 %v3100_v18  ;;  %v249_v17 = vld [vmem:[#allocation2 + $0x658] sm:$0xff] }
 0x12b   :  { %2725 = vmatprep.subr.bf16.mxu0 %v3107_v19  ;;  %2854 = vmatprep.subr.bf16.mxu1 %v3109_v20  ;;  %v253_v18 = vld [vmem:[#allocation2 + $0x678] sm:$0xff]  ;;  %v3162_v19 = vcombine.low %v240_v7, %v244_v8  ;;  %v3164_v20 = vcombine.low %v241_v9, %v245_v10  ;;  %v304_v7 = vld [vmem:[#allocation2 + $0x810] sm:$0xff] }
 0x12c   :  { %2755 = vmatprep.mubr.bf16.mxu0 %v3413_v32  ;;  %2884 = vmatprep.mubr.bf16.mxu1 %v3413_v32  ;;  %v3173_v22 = vcombine.high %v249_v17, %v253_v18  ;;  %v268_v32 = vld [vmem:[#allocation2 + $0x6f0] sm:$0xff]  ;;  %v305_v9 = vld [vmem:[#allocation2 + $0x818] sm:$0xff] }
 0x12d   :  { %v308_v8 = vld [vmem:[#allocation2 + $0x830] sm:$0xff]  ;;  %v309_v10 = vld [vmem:[#allocation2 + $0x838] sm:$0xff] }
 0x12e   :  { %2726 = vmatpush1.bf16.msra.mxu0 %v3106_v26  ;;  %2855 = vmatpush1.bf16.msra.mxu1 %v3108_v27  ;;  %v261_v26 = vld [vmem:[#allocation2 + $0x6b8] sm:$0xff]  ;;  %v3170_v27 = vcombine.low %v248_v15, %v252_v16  ;;  %v312_v15 = vld [vmem:[#allocation2 + $0x850] sm:$0xff] }
 0x12f   :  { %2727 = vmatprep.subr.bf16.mxu0 %v3115_v28  ;;  %2856 = vmatprep.subr.bf16.mxu1 %v3117_v29  ;;  %v3172_v28 = vcombine.low %v249_v17, %v253_v18  ;;  %v3179_v29 = vcombine.high %v256_v23, %v260_v24  ;;  %v3181_v30 = vcombine.high %v257_v25, %v261_v26  ;;  %v316_v16 = vld [vmem:[#allocation2 + $0x870] sm:$0xff]  ;;  %v313_v17 = vld [vmem:[#allocation2 + $0x858] sm:$0xff] }
 0x130   :  { %v317_v18 = vld [vmem:[#allocation2 + $0x878] sm:$0xff] }
 0x132   :  { %2728 = vmatpush1.bf16.msra.mxu0 %v3114_v35  ;;  %2857 = vmatpush1.bf16.msra.mxu1 %v3116_v36  ;;  %v3178_v35 = vcombine.low %v256_v23, %v260_v24  ;;  %v3180_v36 = vcombine.low %v257_v25, %v261_v26  ;;  %v320_v23 = vld [vmem:[#allocation2 + $0x890] sm:$0xff]  ;;  %v3414_v25 = vld [vmem:[%s3597_s0 + $0x8] ss:$24 sps:$4 sm:$0xff]   ;;  %v321_v26 = vld [vmem:[#allocation2 + $0x898] sm:$0xff] }
 0x133   :  { %2729 = vmatprep.subr.bf16.mxu0 %v3123_v37  ;;  %2858 = vmatprep.subr.bf16.mxu1 %v3125_v38  ;;  %v3187_v37 = vcombine.high %v264_v31, %v268_v32  ;;  %v3189_v38 = vcombine.high %v265_v33, %v269_v34  ;;  %v324_v24 = vld [vmem:[#allocation2 + $0x8b0] sm:$0xff] }
 0x136   :  { %2730 = vmatpush1.bf16.msra.mxu0 %v3122_v43  ;;  %2859 = vmatpush1.bf16.msra.mxu1 %v3124_v44  ;;  %v3186_v43 = vcombine.low %v264_v31, %v268_v32  ;;  %v3188_v44 = vcombine.low %v265_v33, %v269_v34  ;;  %v328_v32 = vld [vmem:[#allocation2 + $0x8d0] sm:$0xff] }
 0x137   :  { %2731 = vmatprep.subr.bf16.mxu0 %v3131_v45  ;;  %2860 = vmatprep.subr.bf16.mxu1 %v3133_v46  ;;  %v3195_v45 = vcombine.high %v272_v39, %v276_v40  ;;  %v3197_v46 = vcombine.high %v273_v41, %v277_v42  ;;  %v332_v33 = vld [vmem:[#allocation2 + $0x8f0] sm:$0xff] }
 0x138   :  { %v3415_v34 = vld [vmem:[%s3597_s0 + $0x14] ss:$24 sps:$4 sm:$0xff]  }
 0x13a   :  { %2732 = vmatpush1.bf16.msra.mxu0 %v3130_v51  ;;  %2861 = vmatpush1.bf16.msra.mxu1 %v3132_v52  ;;  %v3194_v51 = vcombine.low %v272_v39, %v276_v40  ;;  %v3196_v52 = vcombine.low %v273_v41, %v277_v42  ;;  %v3251_v39 = vcombine.high %v328_v32, %v332_v33  ;;  %v336_v41 = vld [vmem:[#allocation2 + $0x910] sm:$0xff] }
 0x13b   :  { %2733 = vmatprep.subr.bf16.mxu0 %v3139_v53  ;;  %2862 = vmatprep.subr.bf16.mxu1 %v3141_v54  ;;  %v3203_v53 = vcombine.high %v280_v47, %v284_v48  ;;  %v3205_v54 = vcombine.high %v281_v49, %v285_v50  ;;  %v340_v42 = vld [vmem:[#allocation2 + $0x930] sm:$0xff] }
 0x13e   :  { %2734 = vmatpush1.bf16.msra.mxu0 %v3138_v59  ;;  %2863 = vmatpush1.bf16.msra.mxu1 %v3140_v60  ;;  %v3202_v59 = vcombine.low %v280_v47, %v284_v48  ;;  %v3204_v60 = vcombine.low %v281_v49, %v285_v50  ;;  %v3259_v47 = vcombine.high %v336_v41, %v340_v42  ;;  %v344_v49 = vld [vmem:[#allocation2 + $0x950] sm:$0xff] }
 0x13f   :  { %2735 = vmatprep.subr.bf16.mxu0 %v3147_v61  ;;  %2864 = vmatprep.subr.bf16.mxu1 %v3149_v62  ;;  %v3211_v61 = vcombine.high %v288_v55, %v292_v56  ;;  %v3213_v62 = vcombine.high %v289_v57, %v293_v58  ;;  %v348_v50 = vld [vmem:[#allocation2 + $0x970] sm:$0xff] }
 0x142   :  { %2736 = vmatpush1.bf16.msra.mxu0 %v3146_v3  ;;  %2865 = vmatpush1.bf16.msra.mxu1 %v3148_v4  ;;  %v3210_v3 = vcombine.low %v288_v55, %v292_v56  ;;  %v3212_v4 = vcombine.low %v289_v57, %v293_v58  ;;  %v3267_v55 = vcombine.high %v344_v49, %v348_v50  ;;  %v352_v57 = vld [vmem:[#allocation2 + $0x990] sm:$0xff] }
 0x143   :  { %2737 = vmatprep.subr.bf16.mxu0 %v3155_v5  ;;  %2866 = vmatprep.subr.bf16.mxu1 %v3157_v6  ;;  %v3219_v5 = vcombine.high %v296_v63, %v300_v0  ;;  %v3221_v6 = vcombine.high %v297_v1, %v301_v2  ;;  %v356_v58 = vld [vmem:[#allocation2 + $0x9b0] sm:$0xff] }
 0x146   :  { %2738 = vmatpush1.bf16.msra.mxu0 %v3154_v11  ;;  %2867 = vmatpush1.bf16.msra.mxu1 %v3156_v12  ;;  %v3218_v11 = vcombine.low %v296_v63, %v300_v0  ;;  %v3220_v12 = vcombine.low %v297_v1, %v301_v2  ;;  %v3275_v63 = vcombine.high %v352_v57, %v356_v58  ;;  %v360_v1 = vld [vmem:[#allocation2 + $0x9d0] sm:$0xff] }
 0x147   :  { %2739 = vmatprep.subr.bf16.mxu0 %v3163_v13  ;;  %2868 = vmatprep.subr.bf16.mxu1 %v3165_v14  ;;  %v3227_v13 = vcombine.high %v304_v7, %v308_v8  ;;  %v3229_v14 = vcombine.high %v305_v9, %v309_v10  ;;  %v364_v2 = vld [vmem:[#allocation2 + $0x9f0] sm:$0xff] }
 0x14a   :  { %2740 = vmatpush1.bf16.msra.mxu0 %v3162_v19  ;;  %2869 = vmatpush1.bf16.msra.mxu1 %v3164_v20  ;;  %v3226_v19 = vcombine.low %v304_v7, %v308_v8  ;;  %v3228_v20 = vcombine.low %v305_v9, %v309_v10  ;;  %v3283_v7 = vcombine.high %v360_v1, %v364_v2  ;;  %v368_v9 = vld [vmem:[#allocation2 + $0xa10] sm:$0xff] }
 0x14b   :  { %2741 = vmatprep.subr.bf16.mxu0 %v3171_v21  ;;  %2870 = vmatprep.subr.bf16.mxu1 %v3173_v22  ;;  %v3235_v21 = vcombine.high %v312_v15, %v316_v16  ;;  %v3237_v22 = vcombine.high %v313_v17, %v317_v18  ;;  %v372_v10 = vld [vmem:[#allocation2 + $0xa30] sm:$0xff] }
 0x14e   :  { %2742 = vmatpush1.bf16.msra.mxu0 %v3170_v27  ;;  %2871 = vmatpush1.bf16.msra.mxu1 %v3172_v28  ;;  %v325_v27 = vld [vmem:[#allocation2 + $0x8b8] sm:$0xff]  ;;  %v3234_v28 = vcombine.low %v312_v15, %v316_v16  ;;  %v3291_v15 = vcombine.high %v368_v9, %v372_v10 }
 0x14f   :  { %2743 = vmatprep.subr.bf16.mxu0 %v3179_v29  ;;  %2872 = vmatprep.subr.bf16.mxu1 %v3181_v30  ;;  %v3236_v29 = vcombine.low %v313_v17, %v317_v18  ;;  %v3243_v30 = vcombine.high %v320_v23, %v324_v24  ;;  %v3245_v31 = vcombine.high %v321_v26, %v325_v27  ;;  %v376_v17 = vld [vmem:[#allocation2 + $0xa50] sm:$0xff] }
 0x150   :  { %v380_v18 = vld [vmem:[#allocation2 + $0xa70] sm:$0xff] }
 0x152   :  { %2744 = vmatpush1.bf16.msra.mxu0 %v3178_v35  ;;  %2873 = vmatpush1.bf16.msra.mxu1 %v3180_v36  ;;  %v329_v35 = vld [vmem:[#allocation2 + $0x8d8] sm:$0xff] }
 0x153   :  { %2745 = vmatprep.subr.bf16.mxu0 %v3187_v37  ;;  %2874 = vmatprep.subr.bf16.mxu1 %v3189_v38  ;;  %v333_v36 = vld [vmem:[#allocation2 + $0x8f8] sm:$0xff]  ;;  %v3242_v37 = vcombine.low %v320_v23, %v324_v24  ;;  %v3244_v38 = vcombine.low %v321_v26, %v325_v27  ;;  %v3299_v23 = vcombine.high %v376_v17, %v380_v18  ;;  %v388_v26 = vld [vmem:[#allocation2 + $0xab0] sm:$0xff] }
 0x154   :  { %v3253_v40 = vcombine.high %v329_v35, %v333_v36  ;;  %v385_v27 = vld [vmem:[#allocation2 + $0xa98] sm:$0xff] }
 0x156   :  { %2746 = vmatpush1.bf16.msra.mxu0 %v3186_v43  ;;  %2875 = vmatpush1.bf16.msra.mxu1 %v3188_v44  ;;  %v337_v43 = vld [vmem:[#allocation2 + $0x918] sm:$0xff] }
 0x157   :  { %2747 = vmatprep.subr.bf16.mxu0 %v3195_v45  ;;  %2876 = vmatprep.subr.bf16.mxu1 %v3197_v46  ;;  %v341_v44 = vld [vmem:[#allocation2 + $0x938] sm:$0xff]  ;;  %v3250_v45 = vcombine.low %v328_v32, %v332_v33  ;;  %v3252_v46 = vcombine.low %v329_v35, %v333_v36  ;;  %v392_v33 = vld [vmem:[#allocation2 + $0xad0] sm:$0xff] }
 0x158   :  { %v3261_v48 = vcombine.high %v337_v43, %v341_v44  ;;  %v393_v35 = vld [vmem:[#allocation2 + $0xad8] sm:$0xff] }
 0x159   :  { %v397_v36 = vld [vmem:[#allocation2 + $0xaf8] sm:$0xff] }
 0x15a   :  { %2748 = vmatpush1.bf16.msra.mxu0 %v3194_v51  ;;  %2877 = vmatpush1.bf16.msra.mxu1 %v3196_v52  ;;  %v345_v51 = vld [vmem:[#allocation2 + $0x958] sm:$0xff] }
 0x15b   :  { %2749 = vmatprep.subr.bf16.mxu0 %v3203_v53  ;;  %2878 = vmatprep.subr.bf16.mxu1 %v3205_v54  ;;  %v349_v52 = vld [vmem:[#allocation2 + $0x978] sm:$0xff]  ;;  %v3258_v53 = vcombine.low %v336_v41, %v340_v42  ;;  %v3260_v54 = vcombine.low %v337_v43, %v341_v44  ;;  %v400_v41 = vld [vmem:[#allocation2 + $0xb10] sm:$0xff] }
 0x15c   :  { %v3269_v56 = vcombine.high %v345_v51, %v349_v52  ;;  %v404_v42 = vld [vmem:[#allocation2 + $0xb30] sm:$0xff]  ;;  %v401_v43 = vld [vmem:[#allocation2 + $0xb18] sm:$0xff] }
 0x15d   :  { %v405_v44 = vld [vmem:[#allocation2 + $0xb38] sm:$0xff] }
 0x15e   :  { %2750 = vmatpush1.bf16.msra.mxu0 %v3202_v59  ;;  %2879 = vmatpush1.bf16.msra.mxu1 %v3204_v60  ;;  %v353_v59 = vld [vmem:[#allocation2 + $0x998] sm:$0xff] }
 0x15f   :  { %2751 = vmatprep.subr.bf16.mxu0 %v3211_v61  ;;  %2880 = vmatprep.subr.bf16.mxu1 %v3213_v62  ;;  %v357_v60 = vld [vmem:[#allocation2 + $0x9b8] sm:$0xff]  ;;  %v3266_v61 = vcombine.low %v344_v49, %v348_v50  ;;  %v3268_v62 = vcombine.low %v345_v51, %v349_v52  ;;  %v408_v49 = vld [vmem:[#allocation2 + $0xb50] sm:$0xff] }
 0x160   :  { %v3277_v0 = vcombine.high %v353_v59, %v357_v60  ;;  %v412_v50 = vld [vmem:[#allocation2 + $0xb70] sm:$0xff]  ;;  %v409_v51 = vld [vmem:[#allocation2 + $0xb58] sm:$0xff] }
 0x161   :  { %v413_v52 = vld [vmem:[#allocation2 + $0xb78] sm:$0xff] }
 0x162   :  { %2752 = vmatpush1.bf16.msra.mxu0 %v3210_v3  ;;  %2881 = vmatpush1.bf16.msra.mxu1 %v3212_v4  ;;  %v361_v3 = vld [vmem:[#allocation2 + $0x9d8] sm:$0xff] }
 0x163   :  { %2753 = vmatprep.subr.bf16.mxu0 %v3219_v5  ;;  %2882 = vmatprep.subr.bf16.mxu1 %v3221_v6  ;;  %v365_v4 = vld [vmem:[#allocation2 + $0x9f8] sm:$0xff]  ;;  %v3274_v5 = vcombine.low %v352_v57, %v356_v58  ;;  %v3276_v6 = vcombine.low %v353_v59, %v357_v60  ;;  %v416_v57 = vld [vmem:[#allocation2 + $0xb90] sm:$0xff] }
 0x164   :  { %v3285_v8 = vcombine.high %v361_v3, %v365_v4  ;;  %v420_v58 = vld [vmem:[#allocation2 + $0xbb0] sm:$0xff]  ;;  %v417_v59 = vld [vmem:[#allocation2 + $0xb98] sm:$0xff] }
 0x165   :  { %v421_v60 = vld [vmem:[#allocation2 + $0xbb8] sm:$0xff] }
 0x166   :  { %2754 = vmatpush1.bf16.msra.mxu0 %v3218_v11  ;;  %2883 = vmatpush1.bf16.msra.mxu1 %v3220_v12  ;;  %v369_v11 = vld [vmem:[#allocation2 + $0xa18] sm:$0xff] }
 0x167   :  { %2766 = vmatprep.subr.bf16.mxu0 %v3227_v13  ;;  %2895 = vmatprep.subr.bf16.mxu1 %v3229_v14  ;;  %v373_v12 = vld [vmem:[#allocation2 + $0xa38] sm:$0xff]  ;;  %v3282_v13 = vcombine.low %v360_v1, %v364_v2  ;;  %v3284_v14 = vcombine.low %v361_v3, %v365_v4  ;;  %v424_v1 = vld [vmem:[#allocation2 + $0xbd0] sm:$0xff] }
 0x168   :  { %v3293_v16 = vcombine.high %v369_v11, %v373_v12  ;;  %v428_v2 = vld [vmem:[#allocation2 + $0xbf0] sm:$0xff]  ;;  %v425_v3 = vld [vmem:[#allocation2 + $0xbd8] sm:$0xff] }
 0x169   :  { %2756 = vmatmul.mubr.bf16.vlgmr.msra.gmra.mrb[4].mxu0 %v3414_v25  ;;  %2885 = vmatmul.mubr.bf16.vlgmr.msra.gmra.mrb[4].mxu1 %v3414_v25  ;;  %v384_v25 = vld [vmem:[#allocation2 + $0xa90] sm:$0xff]  ;;  %v429_v4 = vld [vmem:[#allocation2 + $0xbf8] sm:$0xff] }
 0x16a   :  { %2767 = vmatpush1.bf16.msra.mxu0 %v3226_v19  ;;  %2896 = vmatpush1.bf16.msra.mxu1 %v3228_v20  ;;  %v377_v19 = vld [vmem:[#allocation2 + $0xa58] sm:$0xff] }
 0x16b   :  { %2768 = vmatprep.subr.bf16.mxu0 %v3235_v21  ;;  %2897 = vmatprep.subr.bf16.mxu1 %v3237_v22  ;;  %v381_v20 = vld [vmem:[#allocation2 + $0xa78] sm:$0xff]  ;;  %v3290_v21 = vcombine.low %v368_v9, %v372_v10  ;;  %v3292_v22 = vcombine.low %v369_v11, %v373_v12  ;;  %v3346_v9 = vcombine.low %v424_v1, %v428_v2  ;;  %v3416_v11 = vld [vmem:[%s3597_s0 + $0x10] ss:$24 sps:$4 sm:$0xff]   ;;  %v432_v12 = vlaneseq }
 0x16c   :  { %2798 = vmatprep.mubr.bf16.mxu0 %v3415_v34  ;;  %2927 = vmatprep.mubr.bf16.mxu1 %v3415_v34  ;;  %v3301_v24 = vcombine.high %v377_v19, %v381_v20  ;;  %v396_v34 = vld [vmem:[#allocation2 + $0xaf0] sm:$0xff]  ;;  %v3348_v10 = vcombine.low %v425_v3, %v429_v4 }
 0x16e   :  { %2769 = vmatpush1.bf16.msra.mxu0 %v3234_v28  ;;  %2898 = vmatpush1.bf16.msra.mxu1 %v3236_v29  ;;  %v389_v28 = vld [vmem:[#allocation2 + $0xab8] sm:$0xff]  ;;  %v3298_v29 = vcombine.low %v376_v17, %v380_v18 }
 0x16f   :  { %2770 = vmatprep.subr.bf16.mxu0 %v3243_v30  ;;  %2899 = vmatprep.subr.bf16.mxu1 %v3245_v31  ;;  %v3300_v30 = vcombine.low %v377_v19, %v381_v20  ;;  %v3307_v31 = vcombine.high %v384_v25, %v388_v26  ;;  %v3309_v32 = vcombine.high %v385_v27, %v389_v28 }
 0x172   :  { %2771 = vmatpush1.bf16.msra.mxu0 %v3242_v37  ;;  %2900 = vmatpush1.bf16.msra.mxu1 %v3244_v38  ;;  %v3306_v37 = vcombine.low %v384_v25, %v388_v26  ;;  %v3308_v38 = vcombine.low %v385_v27, %v389_v28 }
 0x173   :  { %2772 = vmatprep.subr.bf16.mxu0 %v3251_v39  ;;  %2901 = vmatprep.subr.bf16.mxu1 %v3253_v40  ;;  %v3315_v39 = vcombine.high %v392_v33, %v396_v34  ;;  %v3317_v40 = vcombine.high %v393_v35, %v397_v36 }
 0x176   :  { %2773 = vmatpush1.bf16.msra.mxu0 %v3250_v45  ;;  %2902 = vmatpush1.bf16.msra.mxu1 %v3252_v46  ;;  %v3314_v45 = vcombine.low %v392_v33, %v396_v34  ;;  %v3316_v46 = vcombine.low %v393_v35, %v397_v36 }
 0x177   :  { %2774 = vmatprep.subr.bf16.mxu0 %v3259_v47  ;;  %2903 = vmatprep.subr.bf16.mxu1 %v3261_v48  ;;  %v3323_v47 = vcombine.high %v400_v41, %v404_v42  ;;  %v3325_v48 = vcombine.high %v401_v43, %v405_v44 }
 0x17a   :  { %2775 = vmatpush1.bf16.msra.mxu0 %v3258_v53  ;;  %2904 = vmatpush1.bf16.msra.mxu1 %v3260_v54  ;;  %v3322_v53 = vcombine.low %v400_v41, %v404_v42  ;;  %v3324_v54 = vcombine.low %v401_v43, %v405_v44 }
 0x17b   :  { %2776 = vmatprep.subr.bf16.mxu0 %v3267_v55  ;;  %2905 = vmatprep.subr.bf16.mxu1 %v3269_v56  ;;  %v3331_v55 = vcombine.high %v408_v49, %v412_v50  ;;  %v3333_v56 = vcombine.high %v409_v51, %v413_v52 }
 0x17e   :  { %2777 = vmatpush1.bf16.msra.mxu0 %v3266_v61  ;;  %2906 = vmatpush1.bf16.msra.mxu1 %v3268_v62  ;;  %v3330_v61 = vcombine.low %v408_v49, %v412_v50  ;;  %v3332_v62 = vcombine.low %v409_v51, %v413_v52 }
 0x17f   :  { %2778 = vmatprep.subr.bf16.mxu0 %v3275_v63  ;;  %2907 = vmatprep.subr.bf16.mxu1 %v3277_v0  ;;  %v3339_v63 = vcombine.high %v416_v57, %v420_v58  ;;  %v3341_v0 = vcombine.high %v417_v59, %v421_v60 }
 0x182   :  { %2779 = vmatpush1.bf16.msra.mxu0 %v3274_v5  ;;  %2908 = vmatpush1.bf16.msra.mxu1 %v3276_v6  ;;  %v3338_v5 = vcombine.low %v416_v57, %v420_v58  ;;  %v3340_v6 = vcombine.low %v417_v59, %v421_v60 }
 0x183   :  { %2780 = vmatprep.subr.bf16.mxu0 %v3283_v7  ;;  %2909 = vmatprep.subr.bf16.mxu1 %v3285_v8  ;;  %v3347_v7 = vcombine.high %v424_v1, %v428_v2  ;;  %v3349_v8 = vcombine.high %v425_v3, %v429_v4 }
 0x186   :  { %2781 = vmatpush1.bf16.msra.mxu0 %v3282_v13  ;;  %2910 = vmatpush1.bf16.msra.mxu1 %v3284_v14  ;;  %v433_v13 = vshrl.u32 %v432_v12, 7 }
 0x187   :  { %2782 = vmatprep.subr.bf16.mxu0 %v3291_v15  ;;  %2911 = vmatprep.subr.bf16.mxu1 %v3293_v16  ;;  %v430_v15 = vld [vmem:[#allocation4] sm:$0xff] }
 0x188   :  { %v434_v14 = vsub.s32 0, %v433_v13  ;;  %v442_v16 = vsub.s32 2, %v433_v13  ;;  %v438_v17 = vsub.s32 1, %v433_v13  ;;  %v446_v18 = vsub.s32 3, %v433_v13 }
 0x189   :  { %v454_v41 = vsub.s32 5, %v433_v13  ;;  %v462_v42 = vsub.s32 7, %v433_v13 }
 0x18a   :  { %2783 = vmatpush1.bf16.msra.mxu0 %v3290_v21  ;;  %2912 = vmatpush1.bf16.msra.mxu1 %v3292_v22  ;;  %v435_v19 = vrot.slane %v430_v15, %v434_v14  ;;  %v443_v20 = vrot.slane %v430_v15, %v442_v16  ;;  %v439_v21 = vrot.slane %v430_v15, %v438_v17 }
 0x18b   :  { %2784 = vmatprep.subr.bf16.mxu0 %v3299_v23  ;;  %2913 = vmatprep.subr.bf16.mxu1 %v3301_v24  ;;  %v447_v22 = vrot.slane %v430_v15, %v446_v18 }
 0x18e   :  { %2785 = vmatpush1.bf16.msra.mxu0 %v3298_v29  ;;  %2914 = vmatpush1.bf16.msra.mxu1 %v3300_v30 }
 0x18f   :  { %2786 = vmatprep.subr.bf16.mxu0 %v3307_v31  ;;  %2915 = vmatprep.subr.bf16.mxu1 %v3309_v32 }
 0x192   :  { %2787 = vmatpush1.bf16.msra.mxu0 %v3306_v37  ;;  %2916 = vmatpush1.bf16.msra.mxu1 %v3308_v38 }
 0x193   :  { %2788 = vmatprep.subr.bf16.mxu0 %v3315_v39  ;;  %2917 = vmatprep.subr.bf16.mxu1 %v3317_v40  ;;  %v450_v39 = vsub.s32 4, %v433_v13  ;;  %v458_v40 = vsub.s32 6, %v433_v13 }
 0x195   :  { %v451_v43 = vrot.slane %v430_v15, %v450_v39  ;;  %v459_v44 = vrot.slane %v430_v15, %v458_v40 }
 0x196   :  { %2789 = vmatpush1.bf16.msra.mxu0 %v3314_v45  ;;  %2918 = vmatpush1.bf16.msra.mxu1 %v3316_v46  ;;  %v455_v45 = vrot.slane %v430_v15, %v454_v41  ;;  %v463_v46 = vrot.slane %v430_v15, %v462_v42 }
 0x197   :  { %2790 = vmatprep.subr.bf16.mxu0 %v3323_v47  ;;  %2919 = vmatprep.subr.bf16.mxu1 %v3325_v48 }
 0x19a   :  { %2791 = vmatpush1.bf16.msra.mxu0 %v3322_v53  ;;  %2920 = vmatpush1.bf16.msra.mxu1 %v3324_v54 }
 0x19b   :  { %2792 = vmatprep.subr.bf16.mxu0 %v3331_v55  ;;  %2921 = vmatprep.subr.bf16.mxu1 %v3333_v56 }
 0x19e   :  { %2793 = vmatpush1.bf16.msra.mxu0 %v3330_v61  ;;  %2922 = vmatpush1.bf16.msra.mxu1 %v3332_v62 }
 0x19f   :  { %2794 = vmatprep.subr.bf16.mxu0 %v3339_v63  ;;  %2923 = vmatprep.subr.bf16.mxu1 %v3341_v0 }
 0x1a2   :  { %2795 = vmatpush1.bf16.msra.mxu0 %v3338_v5  ;;  %2924 = vmatpush1.bf16.msra.mxu1 %v3340_v6 }
 0x1a3   :  { %2796 = vmatprep.subr.bf16.mxu0 %v3347_v7  ;;  %2925 = vmatprep.subr.bf16.mxu1 %v3349_v8 }
 0x1a6   :  { %2797 = vmatpush1.bf16.msra.mxu0 %v3346_v9  ;;  %2926 = vmatpush1.bf16.msra.mxu1 %v3348_v10 }
 0x1a9   :  { %2799 = vmatmul.mubr.bf16.vlgmr.msra.gmra.mrb[4].mxu0 %v3416_v11  ;;  %2928 = vmatmul.mubr.bf16.vlgmr.msra.gmra.mrb[4].mxu1 %v3416_v11 }
 0x1bc   :  { %v2542_v23 = vpop.f32.mrb[0].mxu0  ;;  %v2671_v25 = vpop.f32.mrb[0].mxu1 }
 0x1bd   :  { %v3350_v24 = vadd.f32 %v2542_v23, %v435_v19  ;;  %v2544_v26 = vpop.f32.mrb[1].mxu0  ;;  %v3354_v27 = vadd.f32 %v2671_v25, %v443_v20  ;;  %v2673_v29 = vpop.f32.mrb[1].mxu1 }
 0x1be   :  { %v3351_v28 = vadd.f32 %v2544_v26, %v439_v21  ;;  %v2546_v30 = vpop.f32.mrb[2].mxu0  ;;  %v3355_v31 = vadd.f32 %v2673_v29, %v447_v22  ;;  %v2675_v33 = vpop.f32.mrb[2].mxu1 }
 0x1bf   :  { %2938 = vst [vmem:[%s3600_s3] sm:$0xff] %v3350_v24  ;;  %v3352_v32 = vadd.f32 %v2546_v30, %v435_v19  ;;  %v2548_v34 = vpop.f32.mrb[3].mxu0  ;;  %2940 = vst [vmem:[%s3600_s3 + $0x10] sm:$0xff] %v3354_v27  ;;  %v3356_v35 = vadd.f32 %v2675_v33, %v443_v20  ;;  %v2677_v37 = vpop.f32.mrb[3].mxu1 }
 0x1c0   :  { %2939 = vst [vmem:[%s3600_s3 + $0x8] sm:$0xff] %v3351_v28  ;;  %v3353_v36 = vadd.f32 %v2548_v34, %v439_v21  ;;  %2941 = vst [vmem:[%s3600_s3 + $0x18] sm:$0xff] %v3355_v31  ;;  %v3357_v38 = vadd.f32 %v2677_v37, %v447_v22 }
 0x1c1   :  { %2946 = vst [vmem:[%s3600_s3 + $0x40] sm:$0xff] %v3352_v32  ;;  %2948 = vst [vmem:[%s3600_s3 + $0x50] sm:$0xff] %v3356_v35 }
 0x1c2   :  { %2947 = vst [vmem:[%s3600_s3 + $0x48] sm:$0xff] %v3353_v36  ;;  %2949 = vst [vmem:[%s3600_s3 + $0x58] sm:$0xff] %v3357_v38 }
 0x27c   :  { %v2800_v47 = vpop.f32.mrb[4].mxu0  ;;  %v2929_v49 = vpop.f32.mrb[4].mxu1 }
 0x27d   :  { %v3358_v48 = vadd.f32 %v2800_v47, %v451_v43  ;;  %v2802_v50 = vpop.f32.mrb[5].mxu0  ;;  %v3362_v51 = vadd.f32 %v2929_v49, %v459_v44  ;;  %v2931_v53 = vpop.f32.mrb[5].mxu1 }
 0x27e   :  { %v3359_v52 = vadd.f32 %v2802_v50, %v455_v45  ;;  %v2804_v54 = vpop.f32.mrb[6].mxu0  ;;  %v3363_v55 = vadd.f32 %v2931_v53, %v463_v46  ;;  %v2933_v57 = vpop.f32.mrb[6].mxu1 }
 0x27f   :  { %2942 = vst [vmem:[%s3600_s3 + $0x20] sm:$0xff] %v3358_v48  ;;  %v3360_v56 = vadd.f32 %v2804_v54, %v451_v43  ;;  %v2806_v58 = vpop.f32.mrb[7].mxu0  ;;  %2944 = vst [vmem:[%s3600_s3 + $0x30] sm:$0xff] %v3362_v51  ;;  %v3364_v59 = vadd.f32 %v2933_v57, %v459_v44  ;;  %v2935_v61 = vpop.f32.mrb[7].mxu1 }
 0x280   :  { %2943 = vst [vmem:[%s3600_s3 + $0x28] sm:$0xff] %v3359_v52  ;;  %v3361_v60 = vadd.f32 %v2806_v58, %v455_v45  ;;  %2945 = vst [vmem:[%s3600_s3 + $0x38] sm:$0xff] %v3363_v55  ;;  %v3365_v62 = vadd.f32 %v2935_v61, %v463_v46 }
 0x281   :  { %2950 = vst [vmem:[%s3600_s3 + $0x60] sm:$0xff] %v3360_v56  ;;  %2952 = vst [vmem:[%s3600_s3 + $0x70] sm:$0xff] %v3364_v59 }
 0x282   :  { %2951 = vst [vmem:[%s3600_s3 + $0x68] sm:$0xff] %v3361_v60  ;;  %2953 = vst [vmem:[%s3600_s3 + $0x78] sm:$0xff] %v3365_v62 }
 0x283   :  { %2958 = vsyncpa [#allocation3], 1 }
 0x284   :  { %2959 = vsyncpa [#allocation5], 1 }

</bundles_post_ra>
